<compile_context>
chip_gen: v6e
topology: v6e:2x2x1
jax: 0.10.0
libtpu: 0.0.40
codegen_flags: <defaults>
</compile_context>

<pallas_src>
import jax
import jax.numpy as jnp
from jax.experimental import pallas as pl
from jax.experimental.pallas import tpu as pltpu

NUM_CLASSES = 9
IN_CH = 103
IN_CH_PAD = 128            # 103 -> 128 (lane aligned, zero padded)
HID = 64                   # conv1a / conv1b output channels
FEAT = 128                 # concat feature width
K1A = 9 * IN_CH_PAD        # 1152: im2col K for the 3x3 conv (tap-major, channel-minor)
OUT_PAD = 128              # logits padded 9 -> 128 (lane-dense store)
BN_EPS = 1e-5
BATCH_TILE = 128           # batch grid tile (bounds VMEM, shards across TCs on v7x)


def wcrn_kernel(x_ref, w1a_ref, w1b_ref, w2a_ref, w2b_ref, wfc_ref, sp_ref,
                out_ref):
    # x_ref: (bt, 5, 5, 128) bf16 channels-last, channels zero-padded 103->128.
    bt = x_ref.shape[0]
    xb = x_ref[...]                                       # bf16, stays packed

    # ---- conv1b (1x1) over all N*25 pixels as ONE matmul, then MaxPool2d(5) ----
    pb = xb.reshape(bt * 25, IN_CH_PAD)                   # bf16 (bt*25, 128)
    b = jnp.dot(pb, w1b_ref[...], preferred_element_type=jnp.float32)   # (bt*25, 64)
    b_max = jnp.max(b.reshape(bt, 25, HID), axis=1)                     # (bt, 64)

    # ---- conv1a (3x3, valid) as in-kernel im2col + ONE matmul, then MaxPool2d(3) ----
    # Stage in f32 only for the spatial (sublane-dim) slicing; each tap is cast
    # back to bf16 immediately so the wide K=1152 concat buffer stays half-size.
    xf = xb.astype(jnp.float32)
    taps = [xf[:, kh:kh + 3, kw:kw + 3, :].astype(jnp.bfloat16)
            for kh in range(3) for kw in range(3)]
    pa = jnp.concatenate(taps, axis=-1)                                  # (bt, 3, 3, 1152) bf16
    pa = pa.reshape(bt * 9, K1A)
    a = jnp.dot(pa, w1a_ref[...], preferred_element_type=jnp.float32)    # (bt*9, 64)
    a_max = jnp.max(a.reshape(bt, 9, HID), axis=1)                       # (bt, 64)

    # Packed small params: row0=[b1a|b1b], row1=BN scale, row2=BN shift,
    # row3=b2a, row4=b2b, row5=fc bias (zero padded to 128 lanes).
    sp = sp_ref[...]
    # conv bias is position-invariant, so adding it after the max is exact.
    feat = jnp.concatenate([a_max, b_max], axis=-1) + sp[0:1, :]         # (bt, 128)

    # ---- BN (inference, prefolded) -> ReLU -> conv2a -> ReLU -> conv2b ----
    h = jnp.maximum(feat * sp[1:2, :] + sp[2:3, :], 0.0)
    h = jnp.dot(h.astype(jnp.bfloat16), w2a_ref[...],
                preferred_element_type=jnp.float32) + sp[3:4, :]
    h = jnp.maximum(h, 0.0)
    h = jnp.dot(h.astype(jnp.bfloat16), w2b_ref[...],
                preferred_element_type=jnp.float32) + sp[4:5, :]
    res = feat + h                                                       # residual add

    # ---- fc, padded to 128 output lanes (lane-dense store) ----
    logits = jnp.dot(res.astype(jnp.bfloat16), wfc_ref[...],
                     preferred_element_type=jnp.float32) + sp[5:6, :]
    out_ref[...] = logits.astype(out_ref.dtype)


def init_params(key):
    """Parameters in native PyTorch layouts (Conv2d: (out, in, kh, kw), Linear: (out, in))."""
    ks = jax.random.split(key, 10)
    s = 0.05
    f32 = jnp.float32
    return {
        "conv1a_w": jax.random.normal(ks[0], (HID, IN_CH, 3, 3), f32) * s,
        "conv1a_b": jax.random.normal(ks[1], (HID,), f32) * s,
        "conv1b_w": jax.random.normal(ks[2], (HID, IN_CH, 1, 1), f32) * s,
        "conv1b_b": jax.random.normal(ks[3], (HID,), f32) * s,
        # BatchNorm2d(128) default init (running stats).
        "bn_gamma": jnp.ones((FEAT,), f32),
        "bn_beta": jnp.zeros((FEAT,), f32),
        "bn_rmean": jnp.zeros((FEAT,), f32),
        "bn_rvar": jnp.ones((FEAT,), f32),
        "conv2a_w": jax.random.normal(ks[4], (FEAT, FEAT, 1, 1), f32) * s,
        "conv2a_b": jax.random.normal(ks[5], (FEAT,), f32) * s,
        "conv2b_w": jax.random.normal(ks[6], (FEAT, FEAT, 1, 1), f32) * s,
        "conv2b_b": jax.random.normal(ks[7], (FEAT,), f32) * s,
        "fc_w": jax.random.normal(ks[8], (NUM_CLASSES, FEAT), f32) * s,
        "fc_b": jax.random.normal(ks[9], (NUM_CLASSES,), f32) * s,
    }


def pack_params(p):
    """PyTorch layouts -> kernel layouts: transpose to (in, out), pad K/out to 128,
    bf16 matmul weights, fold BN, and pack all small vectors into one (8,128) block."""
    f32, bf16 = jnp.float32, jnp.bfloat16
    # conv1a (64,103,3,3) -> (kh, kw, cin, cout) -> pad cin -> (1152, 64)
    w1a = jnp.transpose(p["conv1a_w"], (2, 3, 1, 0))
    w1a = jnp.pad(w1a, ((0, 0), (0, 0), (0, IN_CH_PAD - IN_CH), (0, 0)))
    w1a = w1a.reshape(K1A, HID).astype(bf16)
    # conv1b (64,103,1,1) -> (cin, cout), pad cin -> (128, 64)
    w1b = jnp.pad(p["conv1b_w"].reshape(HID, IN_CH).T,
                  ((0, IN_CH_PAD - IN_CH), (0, 0))).astype(bf16)
    # conv2a / conv2b (128,128,1,1) -> (cin, cout)
    w2a = p["conv2a_w"].reshape(FEAT, FEAT).T.astype(bf16)
    w2b = p["conv2b_w"].reshape(FEAT, FEAT).T.astype(bf16)
    # fc (9,128) -> (128,9) -> zero-pad output columns to 128
    wfc = jnp.pad(p["fc_w"].T, ((0, 0), (0, OUT_PAD - NUM_CLASSES))).astype(bf16)

    # Fold BN (inference) into scale/shift; pack the small vectors -> one DMA.
    scale = p["bn_gamma"] * jax.lax.rsqrt(p["bn_rvar"] + BN_EPS)
    shift = p["bn_beta"] - p["bn_rmean"] * scale
    rows = [
        jnp.concatenate([p["conv1a_b"], p["conv1b_b"]]),      # row 0: conv1 biases (cat order)
        scale,                                                # row 1: BN scale
        shift,                                                # row 2: BN shift
        p["conv2a_b"],                                        # row 3
        p["conv2b_b"],                                        # row 4
        jnp.pad(p["fc_b"], (0, OUT_PAD - NUM_CLASSES)),       # row 5
        jnp.zeros((FEAT,), f32), jnp.zeros((FEAT,), f32),
    ]
    sp = jnp.stack([r.astype(f32) for r in rows], axis=0)     # (8, 128) f32
    return w1a, w1b, w2a, w2b, wfc, sp


@jax.jit
def wcrn_forward(x, params):
    n = x.shape[0]
    assert x.shape[1:] == (IN_CH, 5, 5), "WCRN forward requires 103x5x5 input patches"
    w1a, w1b, w2a, w2b, wfc, sp = pack_params(params)

    # NCHW -> NHWC, zero-pad channels 103 -> 128, bf16 for the HBM->VMEM transfer.
    x_cl = jnp.transpose(x, (0, 2, 3, 1))
    x_cl = jnp.pad(x_cl, ((0, 0), (0, 0), (0, 0), (0, IN_CH_PAD - IN_CH)))
    x_cl = x_cl.astype(jnp.bfloat16)

    bt = min(n, BATCH_TILE)
    grid = (pl.cdiv(n, bt),)

    def const(shape):
        return pl.BlockSpec(shape, lambda i: tuple(0 for _ in shape))

    out = pl.pallas_call(
        wcrn_kernel,
        out_shape=jax.ShapeDtypeStruct((n, OUT_PAD), jnp.float32),
        grid=grid,
        in_specs=[
            pl.BlockSpec((bt, 5, 5, IN_CH_PAD), lambda i: (i, 0, 0, 0)),
            const((K1A, HID)),          # w1a stays VMEM-resident across the grid
            const((IN_CH_PAD, HID)),    # w1b
            const((FEAT, FEAT)),        # w2a
            const((FEAT, FEAT)),        # w2b
            const((FEAT, OUT_PAD)),     # wfc (padded)
            const((8, FEAT)),           # packed small params
        ],
        out_specs=pl.BlockSpec((bt, OUT_PAD), lambda i: (i, 0)),
        compiler_params=pltpu.CompilerParams(
            dimension_semantics=("parallel",),
            vmem_limit_bytes=32 * 1024 * 1024),
    )(x_cl, w1a, w1b, w2a, w2b, wfc, sp)
    return out[:, :NUM_CLASSES]


def wcrn_reference(x, p):
    """Pure-JAX f32 reference of the PyTorch module (inference-mode BN)."""
    dn = ("NCHW", "OIHW", "NCHW")
    out = jax.lax.conv_general_dilated(x, p["conv1a_w"], (1, 1), "VALID",
                                       dimension_numbers=dn)
    out = out + p["conv1a_b"][None, :, None, None]
    out1 = jax.lax.conv_general_dilated(x, p["conv1b_w"], (1, 1), "VALID",
                                        dimension_numbers=dn)
    out1 = out1 + p["conv1b_b"][None, :, None, None]
    feat = jnp.concatenate([jnp.max(out, axis=(2, 3)),     # MaxPool2d(3) on 3x3
                            jnp.max(out1, axis=(2, 3))],   # MaxPool2d(5) on 5x5
                           axis=1)
    h = (feat - p["bn_rmean"]) * jax.lax.rsqrt(p["bn_rvar"] + BN_EPS)
    h = h * p["bn_gamma"] + p["bn_beta"]
    h = jnp.maximum(h, 0.0)
    h = jnp.maximum(h @ p["conv2a_w"].reshape(FEAT, FEAT).T + p["conv2a_b"], 0.0)
    h = h @ p["conv2b_w"].reshape(FEAT, FEAT).T + p["conv2b_b"]
    res = feat + h
    return res @ p["fc_w"].T + p["fc_b"]


if __name__ == "__main__":
    key = jax.random.PRNGKey(0)
    kx, kp = jax.random.split(key)

    x = jax.random.normal(kx, (2, IN_CH, 5, 5), jnp.float32)
    params = init_params(kp)

    out = wcrn_forward(x, params)
    out = jax.block_until_ready(out)
    assert out.shape == (2, NUM_CLASSES)
    assert bool(jnp.all(jnp.isfinite(out)))

    ref = wcrn_reference(x, params)
    err = float(jnp.max(jnp.abs(out - ref)))
    assert err < 1e-1, f"mismatch vs f32 reference: max abs err {err}"
    print("KERNEL_OK")
</pallas_src>

<mosaic_0001>
module attributes {stable_mosaic.version = 11 : i64} {
  func.func @wcrn_kernel(%arg0: i32, %arg1: memref<2x5x5x128xbf16, #tpu.memory_space<vmem>>, %arg2: memref<1152x64xbf16, #tpu.memory_space<vmem>>, %arg3: memref<128x64xbf16, #tpu.memory_space<vmem>>, %arg4: memref<128x128xbf16, #tpu.memory_space<vmem>>, %arg5: memref<128x128xbf16, #tpu.memory_space<vmem>>, %arg6: memref<128x128xbf16, #tpu.memory_space<vmem>>, %arg7: memref<8x128xf32, #tpu.memory_space<vmem>>, %arg8: memref<2x128xf32, #tpu.memory_space<vmem>>) attributes {dimension_semantics = [#tpu.dimension_semantics<parallel>], iteration_bounds = array<i64: 1>, scalar_prefetch = 0 : i64, scratch_operands = 0 : i64, tpu.core_type = #tpu.core_type<tc>, window_params = [{transform_indices = @transform_0, window_bounds = array<i64: 2, 5, 5, 128>}, {pipeline_mode = #tpu.pipeline_mode<synchronous>, transform_indices = @transform_1, window_bounds = array<i64: 1152, 64>}, {pipeline_mode = #tpu.pipeline_mode<synchronous>, transform_indices = @transform_2, window_bounds = array<i64: 128, 64>}, {pipeline_mode = #tpu.pipeline_mode<synchronous>, transform_indices = @transform_3, window_bounds = array<i64: 128, 128>}, {pipeline_mode = #tpu.pipeline_mode<synchronous>, transform_indices = @transform_4, window_bounds = array<i64: 128, 128>}, {pipeline_mode = #tpu.pipeline_mode<synchronous>, transform_indices = @transform_5, window_bounds = array<i64: 128, 128>}, {pipeline_mode = #tpu.pipeline_mode<synchronous>, transform_indices = @transform_6, window_bounds = array<i64: 8, 128>}, {transform_indices = @transform_7, window_bounds = array<i64: 2, 128>}]} {
    %c0 = arith.constant 0 : index
    %c0_0 = arith.constant 0 : index
    %c0_1 = arith.constant 0 : index
    %c0_2 = arith.constant 0 : index
    %0 = vector.load %arg1[%c0, %c0_0, %c0_1, %c0_2] : memref<2x5x5x128xbf16, #tpu.memory_space<vmem>>, vector<2x5x5x128xbf16>
    %1 = vector.shape_cast %0 : vector<2x5x5x128xbf16> to vector<50x128xbf16>
    %c0_3 = arith.constant 0 : index
    %c0_4 = arith.constant 0 : index
    %2 = vector.load %arg3[%c0_3, %c0_4] : memref<128x64xbf16, #tpu.memory_space<vmem>>, vector<128x64xbf16>
    %cst = arith.constant dense<0.000000e+00> : vector<50x64xf32>
    %3 = tpu.matmul %1, %2, %cst {dimension_numbers = #tpu.dot_dimension_numbers<[1], [0], [0], [1], [0, 0, 1, 1], [], []>} : vector<50x128xbf16>, vector<128x64xbf16>, vector<50x64xf32> -> vector<50x64xf32>
    %4 = vector.shape_cast %3 : vector<50x64xf32> to vector<2x25x64xf32>
    %cst_5 = arith.constant dense<0xFF800000> : vector<2x64xf32>
    %5 = vector.multi_reduction <maximumf>, %4, %cst_5 [1] : vector<2x25x64xf32> to vector<2x64xf32>
    %6 = arith.extf %0 : vector<2x5x5x128xbf16> to vector<2x5x5x128xf32>
    %7 = vector.extract_strided_slice %6 {offsets = [0, 0, 0, 0], sizes = [2, 3, 3, 128], strides = [1, 1, 1, 1]} : vector<2x5x5x128xf32> to vector<2x3x3x128xf32>
    %8 = arith.truncf %7 : vector<2x3x3x128xf32> to vector<2x3x3x128xbf16>
    %9 = vector.extract_strided_slice %6 {offsets = [0, 0, 1, 0], sizes = [2, 3, 3, 128], strides = [1, 1, 1, 1]} : vector<2x5x5x128xf32> to vector<2x3x3x128xf32>
    %10 = arith.truncf %9 : vector<2x3x3x128xf32> to vector<2x3x3x128xbf16>
    %11 = vector.extract_strided_slice %6 {offsets = [0, 0, 2, 0], sizes = [2, 3, 3, 128], strides = [1, 1, 1, 1]} : vector<2x5x5x128xf32> to vector<2x3x3x128xf32>
    %12 = arith.truncf %11 : vector<2x3x3x128xf32> to vector<2x3x3x128xbf16>
    %13 = vector.extract_strided_slice %6 {offsets = [0, 1, 0, 0], sizes = [2, 3, 3, 128], strides = [1, 1, 1, 1]} : vector<2x5x5x128xf32> to vector<2x3x3x128xf32>
    %14 = arith.truncf %13 : vector<2x3x3x128xf32> to vector<2x3x3x128xbf16>
    %15 = vector.extract_strided_slice %6 {offsets = [0, 1, 1, 0], sizes = [2, 3, 3, 128], strides = [1, 1, 1, 1]} : vector<2x5x5x128xf32> to vector<2x3x3x128xf32>
    %16 = arith.truncf %15 : vector<2x3x3x128xf32> to vector<2x3x3x128xbf16>
    %17 = vector.extract_strided_slice %6 {offsets = [0, 1, 2, 0], sizes = [2, 3, 3, 128], strides = [1, 1, 1, 1]} : vector<2x5x5x128xf32> to vector<2x3x3x128xf32>
    %18 = arith.truncf %17 : vector<2x3x3x128xf32> to vector<2x3x3x128xbf16>
    %19 = vector.extract_strided_slice %6 {offsets = [0, 2, 0, 0], sizes = [2, 3, 3, 128], strides = [1, 1, 1, 1]} : vector<2x5x5x128xf32> to vector<2x3x3x128xf32>
    %20 = arith.truncf %19 : vector<2x3x3x128xf32> to vector<2x3x3x128xbf16>
    %21 = vector.extract_strided_slice %6 {offsets = [0, 2, 1, 0], sizes = [2, 3, 3, 128], strides = [1, 1, 1, 1]} : vector<2x5x5x128xf32> to vector<2x3x3x128xf32>
    %22 = arith.truncf %21 : vector<2x3x3x128xf32> to vector<2x3x3x128xbf16>
    %23 = vector.extract_strided_slice %6 {offsets = [0, 2, 2, 0], sizes = [2, 3, 3, 128], strides = [1, 1, 1, 1]} : vector<2x5x5x128xf32> to vector<2x3x3x128xf32>
    %24 = arith.truncf %23 : vector<2x3x3x128xf32> to vector<2x3x3x128xbf16>
    %25 = tpu.concatenate %8, %10, %12, %14, %16, %18, %20, %22, %24 in 3 : vector<2x3x3x128xbf16>, vector<2x3x3x128xbf16>, vector<2x3x3x128xbf16>, vector<2x3x3x128xbf16>, vector<2x3x3x128xbf16>, vector<2x3x3x128xbf16>, vector<2x3x3x128xbf16>, vector<2x3x3x128xbf16>, vector<2x3x3x128xbf16> -> vector<2x3x3x1152xbf16>
    %26 = vector.shape_cast %25 : vector<2x3x3x1152xbf16> to vector<18x1152xbf16>
    %c0_6 = arith.constant 0 : index
    %c0_7 = arith.constant 0 : index
    %27 = vector.load %arg2[%c0_6, %c0_7] : memref<1152x64xbf16, #tpu.memory_space<vmem>>, vector<1152x64xbf16>
    %cst_8 = arith.constant dense<0.000000e+00> : vector<18x64xf32>
    %28 = tpu.matmul %26, %27, %cst_8 {dimension_numbers = #tpu.dot_dimension_numbers<[1], [0], [0], [1], [0, 0, 1, 1], [], []>} : vector<18x1152xbf16>, vector<1152x64xbf16>, vector<18x64xf32> -> vector<18x64xf32>
    %29 = vector.shape_cast %28 : vector<18x64xf32> to vector<2x9x64xf32>
    %cst_9 = arith.constant dense<0xFF800000> : vector<2x64xf32>
    %30 = vector.multi_reduction <maximumf>, %29, %cst_9 [1] : vector<2x9x64xf32> to vector<2x64xf32>
    %c0_10 = arith.constant 0 : index
    %c0_11 = arith.constant 0 : index
    %31 = vector.load %arg7[%c0_10, %c0_11] : memref<8x128xf32, #tpu.memory_space<vmem>>, vector<8x128xf32>
    %32 = tpu.concatenate %30, %5 in 1 : vector<2x64xf32>, vector<2x64xf32> -> vector<2x128xf32>
    %33 = vector.extract_strided_slice %31 {offsets = [0, 0], sizes = [1, 128], strides = [1, 1]} : vector<8x128xf32> to vector<1x128xf32>
    %34 = vector.broadcast %33 : vector<1x128xf32> to vector<2x128xf32>
    %35 = arith.addf %32, %34 : vector<2x128xf32>
    %36 = vector.extract_strided_slice %31 {offsets = [1, 0], sizes = [1, 128], strides = [1, 1]} : vector<8x128xf32> to vector<1x128xf32>
    %37 = vector.broadcast %36 : vector<1x128xf32> to vector<2x128xf32>
    %38 = arith.mulf %35, %37 : vector<2x128xf32>
    %39 = vector.extract_strided_slice %31 {offsets = [2, 0], sizes = [1, 128], strides = [1, 1]} : vector<8x128xf32> to vector<1x128xf32>
    %40 = vector.broadcast %39 : vector<1x128xf32> to vector<2x128xf32>
    %41 = arith.addf %38, %40 : vector<2x128xf32>
    %cst_12 = arith.constant 0.000000e+00 : f32
    %42 = vector.broadcast %cst_12 : f32 to vector<2x128xf32>
    %43 = arith.maximumf %41, %42 : vector<2x128xf32>
    %44 = arith.truncf %43 : vector<2x128xf32> to vector<2x128xbf16>
    %c0_13 = arith.constant 0 : index
    %c0_14 = arith.constant 0 : index
    %45 = vector.load %arg4[%c0_13, %c0_14] : memref<128x128xbf16, #tpu.memory_space<vmem>>, vector<128x128xbf16>
    %cst_15 = arith.constant dense<0.000000e+00> : vector<2x128xf32>
    %46 = tpu.matmul %44, %45, %cst_15 {dimension_numbers = #tpu.dot_dimension_numbers<[1], [0], [0], [1], [0, 0, 1, 1], [], []>} : vector<2x128xbf16>, vector<128x128xbf16>, vector<2x128xf32> -> vector<2x128xf32>
    %47 = vector.extract_strided_slice %31 {offsets = [3, 0], sizes = [1, 128], strides = [1, 1]} : vector<8x128xf32> to vector<1x128xf32>
    %48 = vector.broadcast %47 : vector<1x128xf32> to vector<2x128xf32>
    %49 = arith.addf %46, %48 : vector<2x128xf32>
    %cst_16 = arith.constant 0.000000e+00 : f32
    %50 = vector.broadcast %cst_16 : f32 to vector<2x128xf32>
    %51 = arith.maximumf %49, %50 : vector<2x128xf32>
    %52 = arith.truncf %51 : vector<2x128xf32> to vector<2x128xbf16>
    %c0_17 = arith.constant 0 : index
    %c0_18 = arith.constant 0 : index
    %53 = vector.load %arg5[%c0_17, %c0_18] : memref<128x128xbf16, #tpu.memory_space<vmem>>, vector<128x128xbf16>
    %cst_19 = arith.constant dense<0.000000e+00> : vector<2x128xf32>
    %54 = tpu.matmul %52, %53, %cst_19 {dimension_numbers = #tpu.dot_dimension_numbers<[1], [0], [0], [1], [0, 0, 1, 1], [], []>} : vector<2x128xbf16>, vector<128x128xbf16>, vector<2x128xf32> -> vector<2x128xf32>
    %55 = vector.extract_strided_slice %31 {offsets = [4, 0], sizes = [1, 128], strides = [1, 1]} : vector<8x128xf32> to vector<1x128xf32>
    %56 = vector.broadcast %55 : vector<1x128xf32> to vector<2x128xf32>
    %57 = arith.addf %54, %56 : vector<2x128xf32>
    %58 = arith.addf %35, %57 : vector<2x128xf32>
    %59 = arith.truncf %58 : vector<2x128xf32> to vector<2x128xbf16>
    %c0_20 = arith.constant 0 : index
    %c0_21 = arith.constant 0 : index
    %60 = vector.load %arg6[%c0_20, %c0_21] : memref<128x128xbf16, #tpu.memory_space<vmem>>, vector<128x128xbf16>
    %cst_22 = arith.constant dense<0.000000e+00> : vector<2x128xf32>
    %61 = tpu.matmul %59, %60, %cst_22 {dimension_numbers = #tpu.dot_dimension_numbers<[1], [0], [0], [1], [0, 0, 1, 1], [], []>} : vector<2x128xbf16>, vector<128x128xbf16>, vector<2x128xf32> -> vector<2x128xf32>
    %62 = vector.extract_strided_slice %31 {offsets = [5, 0], sizes = [1, 128], strides = [1, 1]} : vector<8x128xf32> to vector<1x128xf32>
    %63 = vector.broadcast %62 : vector<1x128xf32> to vector<2x128xf32>
    %64 = arith.addf %61, %63 : vector<2x128xf32>
    %c0_23 = arith.constant 0 : index
    %c0_24 = arith.constant 0 : index
    %65 = vector.load %arg8[%c0_23, %c0_24] : memref<2x128xf32, #tpu.memory_space<vmem>>, vector<2x128xf32>
    tpu.vector_store %arg8[%c0_23, %c0_24], %64 {strides = array<i32>} : memref<2x128xf32, #tpu.memory_space<vmem>>, vector<2x128xf32>,
    return
  }
  func.func @transform_0(%arg0: i32) -> (i32, i32, i32, i32) {
    %c0_i32 = arith.constant 0 : i32
    %c0_i32_0 = arith.constant 0 : i32
    %c0_i32_1 = arith.constant 0 : i32
    %c0_i32_2 = arith.constant 0 : i32
    return %arg0, %c0_i32, %c0_i32_0, %c0_i32_1 : i32, i32, i32, i32
  }
  func.func @transform_1(%arg0: i32) -> (i32, i32) {
    %c0_i32 = arith.constant 0 : i32
    %c0_i32_0 = arith.constant 0 : i32
    %c0_i32_1 = arith.constant 0 : i32
    return %c0_i32, %c0_i32_0 : i32, i32
  }
  func.func @transform_2(%arg0: i32) -> (i32, i32) {
    %c0_i32 = arith.constant 0 : i32
    %c0_i32_0 = arith.constant 0 : i32
    %c0_i32_1 = arith.constant 0 : i32
    return %c0_i32, %c0_i32_0 : i32, i32
  }
  func.func @transform_3(%arg0: i32) -> (i32, i32) {
    %c0_i32 = arith.constant 0 : i32
    %c0_i32_0 = arith.constant 0 : i32
    %c0_i32_1 = arith.constant 0 : i32
    return %c0_i32, %c0_i32_0 : i32, i32
  }
  func.func @transform_4(%arg0: i32) -> (i32, i32) {
    %c0_i32 = arith.constant 0 : i32
    %c0_i32_0 = arith.constant 0 : i32
    %c0_i32_1 = arith.constant 0 : i32
    return %c0_i32, %c0_i32_0 : i32, i32
  }
  func.func @transform_5(%arg0: i32) -> (i32, i32) {
    %c0_i32 = arith.constant 0 : i32
    %c0_i32_0 = arith.constant 0 : i32
    %c0_i32_1 = arith.constant 0 : i32
    return %c0_i32, %c0_i32_0 : i32, i32
  }
  func.func @transform_6(%arg0: i32) -> (i32, i32) {
    %c0_i32 = arith.constant 0 : i32
    %c0_i32_0 = arith.constant 0 : i32
    %c0_i32_1 = arith.constant 0 : i32
    return %c0_i32, %c0_i32_0 : i32, i32
  }
  func.func @transform_7(%arg0: i32) -> (i32, i32) {
    %c0_i32 = arith.constant 0 : i32
    %c0_i32_0 = arith.constant 0 : i32
    return %arg0, %c0_i32 : i32, i32
  }
}

</mosaic_0001>

<bundles_post_ra>
// kernel: wcrn_forward.1
= control target key start
LH: loop header
LB: loop body
LE: loop exit
PB: predicated region body
PF: predicated region fallthrough
CT: control target
= control target key end

     0   :  { %v51_v16 = vlaneseq  ;;  %v4303_v29 = vmov 1966171168   ;;  %s5368_s0 = inlined_call_operand.vmem [shape: bf16[2,5,5,128], index: 0, kind: input, shape index: {}]   ;;  %s5369_s1 = inlined_call_operand.vmem [shape: bf16[1152,64], index: 1, kind: input, shape index: {}]   ;;  %s5370_s2 = inlined_call_operand.vmem [shape: bf16[128,64], index: 2, kind: input, shape index: {}]   ;;  %s5371_s3 = inlined_call_operand.vmem [shape: bf16[128,128], index: 3, kind: input, shape index: {}]   ;;  %s5372_s4 = inlined_call_operand.vmem [shape: bf16[128,128], index: 4, kind: input, shape index: {}]   ;;  %s5373_s5 = inlined_call_operand.vmem [shape: bf16[128,128], index: 5, kind: input, shape index: {}]   ;;  %s5374_s6 = inlined_call_operand.vmem [shape: f32[8,128], index: 6, kind: input, shape index: {}]   ;;  %s5375_s7 = inlined_call_operand.hbm [shape: f32[2,128], index: 7, kind: output, shape index: {}]  }
   0x1   :  { %v4167_v0 = vld [vmem:[%s5370_s2 + $0x38] sm:$0xff]   ;;  %v4168_v1 = vld [vmem:[%s5370_s2 + $0x30] sm:$0xff]   ;;  %v4171_v4 = vld [vmem:[%s5370_s2 + $0x28] sm:$0xff]   ;;  %v49_v30 = vunpack.c.l.s4 %v4303_v29 }
   0x2   :  { %4058 = vmatprep.subr.bf16.mxu0 %v4167_v0  ;;  %v4169_v2 = vld [vmem:[%s5369_s1 + $0x78] sm:$0xff]   ;;  %v4172_v5 = vld [vmem:[%s5369_s1 + $0x70] sm:$0xff]   ;;  %v4174_v7 = vld [vmem:[%s5370_s2 + $0x20] sm:$0xff]   ;;  %v4408_v21 = vshrl.u32 %v51_v16, 7 }
   0x3   :  { %4059 = vmatpush3.bf16.msra.mxu0 %v4167_v0  ;;  %v4170_v3 = vld [vmem:[%s5369_s1 + $0x38] sm:$0xff]   ;;  %3909 = vmatprep.subr.bf16.mxu1 %v4169_v2  ;;  %v4173_v6 = vld [vmem:[%s5369_s1 + $0x30] sm:$0xff]   ;;  %v4175_v8 = vld [vmem:[%s5369_s1 + $0x68] sm:$0xff]   ;;  %v50_v38 = vunpack.c.0.s8 %v49_v30 }
   0x4   :  { %4060 = vmatprep.subr.bf16.mxu0 %v4168_v1  ;;  %3910 = vmatpush3.bf16.msra.mxu1 %v4170_v3  ;;  %v4176_v9 = vld [vmem:[%s5369_s1 + $0x28] sm:$0xff]   ;;  %v4178_v10 = vld [vmem:[%s5369_s1 + $0x60] sm:$0xff]   ;;  %v4177_v11 = vld [vmem:[%s5370_s2 + $0x18] sm:$0xff]  }
   0x5   :  { %3911 = vmatprep.subr.bf16.mxu1 %v4172_v5  ;;  %v4179_v12 = vld [vmem:[%s5369_s1 + $0x20] sm:$0xff]   ;;  %v4181_v13 = vld [vmem:[%s5369_s1 + $0x58] sm:$0xff]   ;;  %v4180_v14 = vld [vmem:[%s5370_s2 + $0x10] sm:$0xff]   ;;  %v4477_v43 = vsub.s32 %v50_v38, %v4408_v21 }
   0x6   :  { %v4182_v15 = vld [vmem:[%s5369_s1 + $0x18] sm:$0xff]   ;;  %v4184_v17 = vld [vmem:[%s5369_s1 + $0x50] sm:$0xff]   ;;  %v4183_v18 = vld [vmem:[%s5370_s2 + $0x8] sm:$0xff]  }
   0x7   :  { %4061 = vmatpush3.bf16.msra.mxu0 %v4168_v1  ;;  %v4185_v19 = vld [vmem:[%s5369_s1 + $0x10] sm:$0xff]   ;;  %v4187_v20 = vld [vmem:[%s5369_s1 + $0x48] sm:$0xff]   ;;  %v4186_v22 = vld [vmem:[%s5370_s2] sm:$0xff]  }
   0x8   :  { %4062 = vmatprep.subr.bf16.mxu0 %v4171_v4  ;;  %3912 = vmatpush3.bf16.msra.mxu1 %v4173_v6  ;;  %v4416_v23 = vld [vmem:[%s5368_s0] sm:$0x7]  ;;  %v4421_v24 = vld [vmem:[%s5368_s0 + $0x4] sm:$0x7]  ;;  %v4426_v25 = vld [vmem:[%s5368_s0 + $0x8] sm:$0x7] }
   0x9   :  { %3913 = vmatprep.subr.bf16.mxu1 %v4175_v8  ;;  %v4431_v26 = vld [vmem:[%s5368_s0 + $0xc] sm:$0x7]  ;;  %v4435_v27 = vcombine.low %v4426_v25, %v4426_v25  ;;  %v4440_v28 = vld [vmem:[%s5368_s0 + $0x10] sm:$0x7]  ;;  %v4445_v31 = vld [vmem:[%s5368_s0 + $0x14] sm:$0x7]  ;;  %v4457_v34 = vcombine.low %v4416_v23, %v4416_v23  ;;  %v4466_v39 = vcombine.low %v4421_v24, %v4421_v24  ;;  %v54_v54 = vrot.slane %v4416_v23, %v4477_v43 }
   0xa   :  { %v4450_v32 = vld [vmem:[%s5368_s0 + $0x18] sm:$0x7]  ;;  %v4188_v33 = vld [vmem:[%s5369_s1 + $0x8] sm:$0xff]   ;;  %v4195_v37 = vld [vmem:[%s5369_s1 + $0x40] sm:$0xff]   ;;  %v4470_v40 = vcombine.low %v4431_v26, %v4431_v26  ;;  %v4474_v42 = vcombine.low %v4440_v28, %v4440_v28  ;;  %v4481_v44 = vcombine.low %v4445_v31, %v4445_v31  ;;  %v77_v55 = vrot.slane %v4421_v24, %v4477_v43 }
   0xb   :  { %4063 = vmatpush3.bf16.msra.mxu0 %v4171_v4  ;;  %v1362_v35 = vshrl.u32 %v4435_v27, 16  ;;  %v1364_v36 = vshll.u32 %v4435_v27, 16  ;;  %v4196_v45 = vld [vmem:[%s5369_s1 + $0xf8] sm:$0xff]   ;;  %v4493_v47 = vcombine.low %v4450_v32, %v4450_v32  ;;  %v1348_v48 = vshrl.u32 %v4457_v34, 16  ;;  %v4197_v50 = vld [vmem:[%s5369_s1] sm:$0xff]  }
   0xc   :  { %4064 = vmatprep.subr.bf16.mxu0 %v4174_v7  ;;  %3914 = vmatpush3.bf16.msra.mxu1 %v4176_v9  ;;  %v4489_v46 = vld [vmem:[%s5368_s0 + $0x1c] sm:$0x7]  ;;  %v1350_v52 = vshll.u32 %v4457_v34, 16  ;;  %v1355_v53 = vshrl.u32 %v4466_v39, 16  ;;  %v100_v56 = vrot.slane %v4426_v25, %v4477_v43  ;;  %v123_v57 = vrot.slane %v4431_v26, %v4477_v43 }
   0xd   :  { %3915 = vmatprep.subr.bf16.mxu1 %v4178_v10  ;;  %v1366_v41 = vrot.slane %v1364_v36, 1  ;;  %v4503_v51 = vcombine.low %v4489_v46, %v4489_v46  ;;  %v146_v59 = vrot.slane %v4440_v28, %v4477_v43  ;;  %v169_v60 = vrot.slane %v4445_v31, %v4477_v43  ;;  %v4204_v62 = vld [vmem:[%s5369_s1 + $0x178] sm:$0xff]  }
   0xe   :  { %v4523_v61 = vrot.slane %v4450_v32, %v4477_v43  ;;  %v55_v63 = vcombine.high %v54_v54, %v54_v54  ;;  %v62_v0 = vrot.slane %v54_v54, %v4477_v43  ;;  %v78_v1 = vcombine.high %v77_v55, %v77_v55 }
   0xf   :  { %4065 = vmatpush3.bf16.msra.mxu0 %v4174_v7  ;;  %v4496_v49 = vor.u32 %v1366_v41, %v1362_v35  ;;  %v85_v2 = vrot.slane %v77_v55, %v4477_v43  ;;  %v101_v3 = vcombine.high %v100_v56, %v100_v56  ;;  %v108_v4 = vrot.slane %v100_v56, %v4477_v43 }
  0x10   :  { %4066 = vmatprep.subr.bf16.mxu0 %v4177_v11  ;;  %3916 = vmatpush3.bf16.msra.mxu1 %v4179_v12  ;;  %v131_v5 = vrot.slane %v123_v57, %v4477_v43  ;;  %v124_v6 = vcombine.high %v123_v57, %v123_v57  ;;  %v69_v7 = vrot.slane %v55_v63, %v4477_v43 }
  0x11   :  { %3917 = vmatprep.subr.bf16.mxu1 %v4181_v13  ;;  %v3770_v58 = vcombine.low %v4426_v25, %v4496_v49  ;;  %v70_v8 = vcombine.high %v62_v0, %v62_v0  ;;  %v92_v9 = vrot.slane %v78_v1, %v4477_v43  ;;  %v93_v10 = vcombine.high %v85_v2, %v85_v2 }
  0x12   :  { %v116_v12 = vcombine.high %v108_v4, %v108_v4  ;;  %v284_v13 = vunpack.i.h.s16 %v85_v2  ;;  %v154_v29 = vrot.slane %v146_v59, %v4477_v43  ;;  %v170_v35 = vcombine.high %v169_v60, %v169_v60 }
  0x13   :  { %4067 = vmatpush3.bf16.msra.mxu0 %v4177_v11  ;;  %v115_v11 = vrot.slane %v101_v3, %v4477_v43  ;;  %v3729_v16 = vpack.i.b16 %v85_v2, %v70_v8  ;;  %v177_v36 = vrot.slane %v169_v60, %v4477_v43  ;;  %v4543_v56 = vrot.slane %v4523_v61, %v4477_v43  ;;  %v4550_v60 = vld [vmem:[%s5368_s0 + $0x20] sm:$0x7] }
  0x14   :  { %4068 = vmatprep.subr.bf16.mxu0 %v4180_v14  ;;  %3918 = vmatpush3.bf16.msra.mxu1 %v4182_v15  ;;  %v286_v15 = vunpack.i.h.s16 %v92_v9  ;;  %v184_v54 = vrot.slane %v170_v35, %v4477_v43 }
  0x15   :  { %3919 = vmatprep.subr.bf16.mxu1 %v4184_v17  ;;  %v369_v17 = vcombine.low %v62_v0, %v69_v7  ;;  %v185_v55 = vcombine.high %v177_v36, %v177_v36  ;;  %v304_v1 = vunpack.i.h.s16 %v177_v36 }
  0x16   :  { %v3731_v30 = vpack.i.b16 %v93_v10, %v286_v15  ;;  %v306_v2 = vunpack.i.h.s16 %v184_v54 }
  0x17   :  { %4069 = vmatpush3.bf16.msra.mxu0 %v4180_v14  ;;  %v138_v14 = vrot.slane %v124_v6, %v4477_v43  ;;  %v3736_v10 = vpack.i.b16 %v184_v54, %v304_v1 }
  0x18   :  { %4070 = vmatprep.subr.bf16.mxu0 %v4183_v18  ;;  %3920 = vmatpush3.bf16.msra.mxu1 %v4185_v19  ;;  %v3730_v19 = vpack.i.b16 %v92_v9, %v284_v13 }
  0x19   :  { %3921 = vmatprep.subr.bf16.mxu1 %v4187_v20  ;;  %v3732_v20 = vpack.i.b16 %v131_v5, %v116_v12  ;;  %v296_v63 = vunpack.i.h.s16 %v138_v14  ;;  %v4560_v12 = vcombine.low %v4550_v60, %v4550_v60 }
  0x1b   :  { %4071 = vmatpush3.bf16.msra.mxu0 %v4183_v18  ;;  %v139_v18 = vcombine.high %v131_v5, %v131_v5  ;;  %v372_v38 = vcombine.low %v115_v11, %v3732_v20  ;;  %v3737_v11 = vpack.i.b16 %v185_v55, %v306_v2  ;;  %v1352_v20 = vrot.slane %v1350_v52, 1  ;;  %v4198_v2 = vld [vmem:[%s5369_s1 + $0xb8] sm:$0xff]  }
  0x1c   :  { %4072 = vmatprep.subr.bf16.mxu0 %v4186_v22  ;;  %3922 = vmatpush3.bf16.msra.mxu1 %v4188_v33  ;;  %v379_v33 = vrot.slane %v369_v17, %v4477_v43  ;;  %v1376_v52 = vshrl.u32 %v4493_v47, 16  ;;  %v1378_v55 = vshll.u32 %v4493_v47, 16 }
  0x1d   :  { %3923 = vmatprep.subr.bf16.mxu1 %v4195_v37  ;;  %v370_v37 = vcombine.low %v3729_v16, %v3730_v19  ;;  %v3734_v8 = vpack.i.b16 %v139_v18, %v296_v63  ;;  %v421_v19 = vcombine.low %v3737_v11, %v4543_v56 }
  0x1f   :  { %4073 = vmatpush3.bf16.msra.mxu0 %v4186_v22  ;;  %v147_v22 = vcombine.high %v146_v59, %v146_v59  ;;  %v386_v57 = vrot.slane %v370_v37, %v4477_v43  ;;  %v400_v59 = vrot.slane %v372_v38, %v4477_v43  ;;  %v449_v37 = vrot.slane %v421_v19, %v4477_v43 }
  0x20   :  { %3937 = vmatprep.subr.bf16.mxu0 %v4196_v45  ;;  %3924 = vmatpush3.bf16.msra.mxu1 %v4197_v50  ;;  %v162_v45 = vcombine.high %v154_v29, %v154_v29  ;;  %v371_v50 = vcombine.low %v3731_v30, %v108_v4  ;;  %v4556_v4 = vld [vmem:[%s5368_s0 + $0x24] sm:$0x7]  ;;  %v1369_v30 = vshrl.u32 %v4481_v44, 16  ;;  %v1353_v38 = vor.u32 %v1352_v20, %v1348_v48 }
  0x21   :  { %3965 = vmatprep.subr.bf16.mxu1 %v4204_v62  ;;  %v161_v41 = vrot.slane %v147_v22, %v4477_v43  ;;  %v294_v62 = vunpack.i.h.s16 %v131_v5  ;;  %v401_v6 = vcombine.low %v379_v33, %v386_v57  ;;  %v4566_v17 = vcombine.low %v4556_v4, %v4556_v4 }
  0x22   :  { %v393_v0 = vrot.slane %v371_v50, %v4477_v43  ;;  %v3735_v3 = vpack.i.b16 %v177_v36, %v162_v45  ;;  %v1371_v33 = vshll.u32 %v4481_v44, 16  ;;  %v1383_v57 = vshrl.u32 %v4503_v51, 16 }
  0x23   :  { %v3733_v7 = vpack.i.b16 %v138_v14, %v294_v62  ;;  %v419_v5 = vcombine.low %v154_v29, %v161_v41  ;;  %v409_v13 = vrot.slane %v401_v6, %v4477_v43  ;;  %v1357_v29 = vshll.u32 %v4466_v39, 16 }
  0x24   :  { %v402_v9 = vcombine.low %v393_v0, %v400_v59  ;;  %v420_v18 = vcombine.low %v3735_v3, %v3736_v10  ;;  %v1373_v50 = vrot.slane %v1371_v33, 1  ;;  %v1385_v59 = vshll.u32 %v4503_v51, 16 }
  0x25   :  { %v418_v15 = vcombine.low %v3733_v7, %v3734_v8  ;;  %v435_v16 = vrot.slane %v419_v5, %v4477_v43  ;;  %v1359_v45 = vrot.slane %v1357_v29, 1  ;;  %v1395_v48 = vrot.slane %v4457_v34, 1 }
  0x26   :  { %v416_v14 = vrot.slane %v402_v9, %v4477_v43  ;;  %v442_v36 = vrot.slane %v420_v18, %v4477_v43  ;;  %v4587_v0 = vor.u32 %v1373_v50, %v1369_v30  ;;  %v1380_v3 = vrot.slane %v1378_v55, 1  ;;  %v4207_v50 = vld [vmem:[%s5369_s1 + $0xe8] sm:$0xff]  }
  0x27   :  { %v428_v22 = vrot.slane %v418_v15, %v4477_v43  ;;  %v1360_v63 = vor.u32 %v1359_v45, %v1355_v53  ;;  %v1387_v6 = vrot.slane %v1385_v59, 1  ;;  %v1396_v7 = vrot.slane %v4466_v39, 1  ;;  %v4203_v39 = vld [vmem:[%s5369_s1 + $0xf0] sm:$0xff]  }
  0x28   :  { %v417_v35 = vcombine.low %v409_v13, %v416_v14  ;;  %v451_v54 = vcombine.low %v442_v36, %v449_v37  ;;  %v4596_v8 = vrot.slane %v4435_v27, 1  ;;  %v1398_v5 = vrot.slane %v4481_v44, 1  ;;  %v4219_v44 = vld [vmem:[%s5369_s1 + $0xd0] sm:$0xff]  }
  0x29   :  { %v450_v41 = vcombine.low %v428_v22, %v435_v16  ;;  %v1399_v53 = vrot.slane %v4493_v47, 1  ;;  %v4601_v9 = vrot.slane %v4503_v51, 1  ;;  %v4603_v10 = vor.u32 %v1380_v3, %v1376_v52  ;;  %v4209_v3 = vld [vmem:[%s5369_s1 + $0xa8] sm:$0xff]  }
  0x2a   :  { %4074 = vmatprep.mubr.bf16.mxu0 %v417_v35  ;;  %v465_v1 = vrot.slane %v451_v54, %v4477_v43  ;;  %v4605_v11 = vor.u32 %v1387_v6, %v1383_v57  ;;  %v1402_v13 = vshrl.u32 %v4470_v40, 16  ;;  %v1404_v27 = vshll.u32 %v4470_v40, 16  ;;  %v4205_v35 = vld [vmem:[%s5369_s1 + $0xb0] sm:$0xff]   ;;  %v4223_v47 = vld [vmem:[%s5369_s1 + $0xc8] sm:$0xff]  }
  0x2b   :  { %v458_v62 = vrot.slane %v450_v41, %v4477_v43  ;;  %v1409_v15 = vshrl.u32 %v4560_v12, 16  ;;  %v1411_v16 = vshll.u32 %v4560_v12, 16  ;;  %v1417_v51 = vrot.slane %v4470_v40, 1 }
  0x2c   :  { %v1418_v14 = vrot.slane %v4560_v12, 1  ;;  %v1420_v18 = vshrl.u32 %v4474_v42, 16  ;;  %v1422_v19 = vshll.u32 %v4474_v42, 16  ;;  %v1427_v20 = vshrl.u32 %v4566_v17, 16 }
  0x2d   :  { %v466_v34 = vcombine.low %v458_v62, %v465_v1  ;;  %v1406_v22 = vrot.slane %v1404_v27, 1  ;;  %v1413_v29 = vrot.slane %v1411_v16, 1  ;;  %v1429_v30 = vshll.u32 %v4566_v17, 16 }
  0x2e   :  { %v3768_v33 = vcombine.low %v4416_v23, %v1353_v38  ;;  %v1424_v36 = vrot.slane %v1422_v19, 1  ;;  %v3769_v37 = vcombine.low %v1395_v48, %v4421_v24  ;;  %v1439_v41 = vcombine.low %v1360_v63, %v1396_v7 }
  0x2f   :  { %4075 = vmatmul.mubr.bf16.vlgmr.msra.gmra.mxu0 %v466_v34  ;;  %v4629_v45 = vrot.slane %v3770_v58, %v4477_v43  ;;  %v1407_v23 = vor.u32 %v1406_v22, %v1402_v13  ;;  %v4634_v38 = vor.u32 %v1413_v29, %v1409_v15  ;;  %v1431_v52 = vrot.slane %v1429_v30, 1  ;;  %v4213_v30 = vld [vmem:[%s5369_s1 + $0xa0] sm:$0xff]  }
  0x30   :  { %3938 = vmatpush3.bf16.msra.mxu0 %v4198_v2  ;;  %v1447_v54 = vrot.slane %v3768_v33, %v4477_v43  ;;  %v1425_v55 = vor.u32 %v1424_v36, %v1420_v18  ;;  %v1454_v57 = vrot.slane %v3769_v37, %v4477_v43  ;;  %v1461_v59 = vrot.slane %v1439_v41, %v4477_v43  ;;  %v4215_v41 = vld [vmem:[%s5369_s1 + $0xd8] sm:$0xff]  }
  0x31   :  { %3939 = vmatprep.subr.bf16.mxu0 %v4203_v39  ;;  %v3771_v62 = vcombine.low %v4421_v24, %v1360_v63  ;;  %v4640_v58 = vor.u32 %v1431_v52, %v1427_v20  ;;  %v3772_v48 = vcombine.low %v1396_v7, %v4426_v25  ;;  %v1527_v1 = vcombine.low %v4496_v49, %v4596_v8  ;;  %v4211_v25 = vld [vmem:[%s5369_s1 + $0xe0] sm:$0xff]  }
  0x32   :  { %v3773_v2 = vcombine.low %v4431_v26, %v1407_v23  ;;  %v1469_v6 = vcombine.low %v1447_v54, %v1454_v57  ;;  %v1470_v34 = vcombine.high %v1447_v54, %v1454_v57  ;;  %v1471_v13 = vcombine.low %v1461_v59, %v4629_v45 }
  0x33   :  { %v1472_v24 = vcombine.high %v1461_v59, %v4629_v45  ;;  %v1535_v49 = vrot.slane %v3771_v62, %v4477_v43  ;;  %v1542_v63 = vrot.slane %v3772_v48, %v4477_v43  ;;  %v1549_v7 = vrot.slane %v1527_v1, %v4477_v43 }
  0x34   :  { %3940 = vmatpush3.bf16.msra.mxu0 %v4205_v35  ;;  %v1556_v39 = vrot.slane %v3773_v2, %v4477_v43  ;;  %v4659_v27 = vrot.slane %v1469_v6, %v4477_v43  ;;  %v4662_v15 = vrot.slane %v1470_v34, %v4477_v43  ;;  %v4665_v16 = vrot.slane %v1471_v13, %v4477_v43 }
  0x35   :  { %3941 = vmatprep.subr.bf16.mxu0 %v4207_v50  ;;  %v4668_v18 = vrot.slane %v1472_v24, %v4477_v43  ;;  %v1557_v19 = vcombine.low %v1535_v49, %v1542_v63  ;;  %v1558_v20 = vcombine.high %v1535_v49, %v1542_v63  ;;  %v3774_v36 = vcombine.low %v4596_v8, %v4431_v26 }
  0x36   :  { %v1559_v22 = vcombine.low %v1549_v7, %v1556_v39  ;;  %v1560_v29 = vcombine.high %v1549_v7, %v1556_v39  ;;  %v1501_v33 = vcombine.low %v4659_v27, %v4665_v16  ;;  %v1614_v37 = vcombine.low %v1407_v23, %v1417_v51 }
  0x37   :  { %v1502_v35 = vcombine.low %v4662_v15, %v4668_v18  ;;  %v1567_v50 = vrot.slane %v1557_v19, %v4477_v43  ;;  %v4686_v52 = vrot.slane %v1558_v20, %v4477_v43  ;;  %v3775_v26 = vcombine.low %v4440_v28, %v1425_v55  ;;  %v4217_v55 = vld [vmem:[%s5369_s1 + $0x98] sm:$0xff]  }
  0x38   :  { %3942 = vmatpush3.bf16.msra.mxu0 %v4209_v3  ;;  %v1581_v54 = vrot.slane %v1559_v22, %v4477_v43  ;;  %v4690_v57 = vrot.slane %v1560_v29, %v4477_v43  ;;  %v1622_v59 = vrot.slane %v3774_v36, %v4477_v43  ;;  %v1629_v23 = vrot.slane %v1614_v37, %v4477_v43 }
  0x39   :  { %3943 = vmatprep.subr.bf16.mxu0 %v4211_v25  ;;  %v3776_v62 = vcombine.low %v4445_v31, %v4587_v0  ;;  %v3777_v2 = vcombine.low %v1398_v5, %v4450_v32  ;;  %v1695_v28 = vcombine.low %v4603_v10, %v1399_v53  ;;  %v1636_v31 = vrot.slane %v3775_v26, %v4477_v43 }
  0x3a   :  { %v4697_v48 = vcombine.low %v1567_v50, %v1581_v54  ;;  %v1590_v1 = vcombine.low %v4686_v52, %v4690_v57  ;;  %v1637_v0 = vcombine.low %v4629_v45, %v1622_v59  ;;  %v1638_v3 = vcombine.high %v4629_v45, %v1622_v59 }
  0x3b   :  { %v3778_v6 = vcombine.low %v4489_v46, %v4605_v11  ;;  %v1703_v5 = vrot.slane %v3776_v62, %v4477_v43  ;;  %v1710_v34 = vrot.slane %v3777_v2, %v4477_v43  ;;  %v1717_v13 = vrot.slane %v1695_v28, %v4477_v43  ;;  %v4225_v28 = vld [vmem:[%s5369_s1 + $0x88] sm:$0xff]  }
  0x3c   :  { %3944 = vmatpush3.bf16.msra.mxu0 %v4213_v30  ;;  %v3779_v24 = vcombine.low %v4450_v32, %v4603_v10  ;;  %v1639_v25 = vcombine.low %v1629_v23, %v1636_v31  ;;  %v1640_v49 = vcombine.high %v1629_v23, %v1636_v31  ;;  %v4724_v45 = vrot.slane %v1637_v0, %v4477_v43  ;;  %v4221_v32 = vld [vmem:[%s5369_s1 + $0x90] sm:$0xff]  }
  0x3d   :  { %3945 = vmatprep.subr.bf16.mxu0 %v4215_v41  ;;  %v1654_v63 = vrot.slane %v1638_v3, %v4477_v43  ;;  %v4728_v7 = vrot.slane %v3778_v6, %v4477_v43  ;;  %v1725_v39 = vcombine.low %v1703_v5, %v1710_v34  ;;  %v1726_v19 = vcombine.high %v1703_v5, %v1710_v34  ;;  %v4227_v6 = vld [vmem:[%s5369_s1 + $0xc0] sm:$0xff]  }
  0x3e   :  { %v3780_v20 = vcombine.low %v1399_v53, %v4489_v46  ;;  %v4737_v10 = vrot.slane %v1639_v25, %v4477_v43  ;;  %v1668_v22 = vrot.slane %v1640_v49, %v4477_v43  ;;  %v1783_v29 = vcombine.low %v4605_v11, %v4601_v9 }
  0x3f   :  { %v3781_v30 = vcombine.low %v4550_v60, %v4634_v38  ;;  %v1727_v53 = vcombine.low %v1717_v13, %v4728_v7  ;;  %v1728_v36 = vcombine.high %v1717_v13, %v4728_v7  ;;  %v1735_v37 = vrot.slane %v1725_v39, %v4477_v43 }
  0x40   :  { %3946 = vmatpush3.bf16.msra.mxu0 %v4217_v55  ;;  %v1742_v41 = vrot.slane %v1726_v19, %v4477_v43  ;;  %v1669_v50 = vcombine.low %v4724_v45, %v4737_v10  ;;  %v1670_v11 = vcombine.low %v1654_v63, %v1668_v22  ;;  %v1791_v54 = vrot.slane %v3779_v24, %v4477_v43 }
  0x41   :  { %3947 = vmatprep.subr.bf16.mxu0 %v4219_v44  ;;  %v1798_v26 = vrot.slane %v3780_v20, %v4477_v43  ;;  %v1749_v59 = vrot.slane %v1727_v53, %v4477_v43  ;;  %v1756_v23 = vrot.slane %v1728_v36, %v4477_v43  ;;  %v1805_v62 = vrot.slane %v1783_v29, %v4477_v43 }
  0x42   :  { %v1812_v2 = vrot.slane %v3781_v30, %v4477_v43  ;;  %v3782_v0 = vcombine.low %v4601_v9, %v4550_v60  ;;  %v1870_v3 = vcombine.low %v4634_v38, %v1418_v14  ;;  %v3783_v49 = vcombine.low %v4556_v4, %v4640_v58 }
  0x43   :  { %v1813_v55 = vcombine.low %v1791_v54, %v1798_v26  ;;  %v1814_v31 = vcombine.high %v1791_v54, %v1798_v26  ;;  %v1757_v44 = vcombine.low %v1735_v37, %v1749_v59  ;;  %v1758_v5 = vcombine.low %v1742_v41, %v1756_v23 }
  0x44   :  { %3948 = vmatpush3.bf16.msra.mxu0 %v4221_v32  ;;  %v1815_v34 = vcombine.low %v1805_v62, %v1812_v2  ;;  %v1816_v13 = vcombine.high %v1805_v62, %v1812_v2  ;;  %v4777_v63 = vrot.slane %v3782_v0, %v4477_v43  ;;  %v4784_v19 = vrot.slane %v1870_v3, %v4477_v43  ;;  %v4229_v32 = vld [vmem:[%s5369_s1 + $0x80] sm:$0xff]  }
  0x45   :  { %3949 = vmatprep.subr.bf16.mxu0 %v4223_v47  ;;  %v4771_v24 = vrot.slane %v1813_v55, %v4477_v43  ;;  %v1830_v25 = vrot.slane %v1814_v31, %v4477_v43  ;;  %v1957_v20 = vunpack.i.h.s16 %v4697_v48  ;;  %v4791_v58 = vrot.slane %v3783_v49, %v4477_v43  ;;  %v4232_v47 = vld [vmem:[%s5369_s1 + $0x1f8] sm:$0xff]  }
  0x46   :  { %v4780_v38 = vrot.slane %v1815_v34, %v4477_v43  ;;  %v1844_v39 = vrot.slane %v1816_v13, %v4477_v43  ;;  %v1893_v22 = vcombine.low %v4728_v7, %v4777_v63  ;;  %v1969_v29 = vunpack.i.h.s16 %v1757_v44 }
  0x47   :  { %v4799_v30 = vpack.i.b16 %v4697_v48, %v1502_v35  ;;  %v4809_v37 = vpack.i.b16 %v1590_v1, %v1957_v20  ;;  %v4811_v41 = vpack.i.b16 %v1757_v44, %v1670_v11  ;;  %v1895_v15 = vcombine.low %v4784_v19, %v4791_v58 }
  0x48   :  { %3950 = vmatpush3.bf16.msra.mxu0 %v4225_v28  ;;  %v1845_v53 = vcombine.low %v4771_v24, %v4780_v38  ;;  %v1846_v36 = vcombine.low %v1830_v25, %v1844_v39  ;;  %v1903_v18 = vrot.slane %v1893_v22, %v4477_v43  ;;  %v4816_v35 = vpack.i.b16 %v1758_v5, %v1969_v29 }
  0x49   :  { %3951 = vmatprep.subr.bf16.mxu0 %v4227_v6  ;;  %v3796_v48 = vcombine.low %v4659_v27, %v4799_v30  ;;  %v3797_v54 = vcombine.low %v4809_v37, %v4724_v45  ;;  %v193_v52 = vcombine.high %v4523_v61, %v4523_v61  ;;  %v208_v57 = vcombine.high %v4543_v56, %v4543_v56  ;;  %v4210_v45 = vld [vmem:[%s5369_s1 + $0x130] sm:$0xff]  }
  0x4a   :  { %v215_v1 = vrot.slane %v4489_v46, %v4477_v43  ;;  %v1917_v11 = vrot.slane %v1895_v15, %v4477_v43  ;;  %v2151_v26 = vcombine.low %v4811_v41, %v4816_v35  ;;  %v238_v23 = vrot.slane %v4550_v60, %v4477_v43 }
  0x4b   :  { %v2161_v59 = vrot.slane %v3796_v48, %v4477_v43  ;;  %v2175_v61 = vrot.slane %v3797_v54, %v4477_v43  ;;  %v207_v62 = vrot.slane %v193_v52, %v4477_v43  ;;  %v261_v13 = vrot.slane %v4556_v4, %v4477_v43 }
  0x4c   :  { %3952 = vmatpush3.bf16.msra.mxu0 %v4229_v32  ;;  %v216_v56 = vcombine.high %v215_v1, %v215_v1  ;;  %v223_v2 = vrot.slane %v215_v1, %v4477_v43  ;;  %v4837_v46 = vcombine.low %v1903_v18, %v1917_v11  ;;  %v2189_v28 = vrot.slane %v2151_v26, %v4477_v43 }
  0x4d   :  { %3993 = vmatprep.subr.bf16.mxu0 %v4232_v47  ;;  %v239_v55 = vcombine.high %v238_v23, %v238_v23  ;;  %v246_v31 = vrot.slane %v238_v23, %v4477_v43  ;;  %v2212_v0 = vcombine.high %v2161_v59, %v2175_v61  ;;  %v2211_v3 = vcombine.low %v2161_v59, %v2175_v61 }
  0x4e   :  { %v230_v6 = vrot.slane %v216_v56, %v4477_v43  ;;  %v231_v60 = vcombine.high %v223_v2, %v223_v2  ;;  %v3792_v44 = vpack.i.b16 %v4837_v46, %v1846_v36  ;;  %v314_v39 = vunpack.i.h.s16 %v223_v2 }
  0x4f   :  { %v253_v5 = vrot.slane %v239_v55, %v4477_v43  ;;  %v254_v34 = vcombine.high %v246_v31, %v246_v31  ;;  %v4847_v25 = vrot.slane %v2212_v0, %v4477_v43  ;;  %v4850_v49 = vrot.slane %v2211_v3, %v4477_v43 }
  0x50   :  { %v316_v20 = vunpack.i.h.s16 %v230_v6  ;;  %v3798_v32 = vcombine.low %v4771_v24, %v3792_v44  ;;  %v262_v22 = vcombine.high %v261_v13, %v261_v13  ;;  %v269_v29 = vrot.slane %v261_v13, %v4477_v43 }
  0x51   :  { %v3738_v47 = vpack.i.b16 %v223_v2, %v208_v57  ;;  %v3739_v36 = vpack.i.b16 %v230_v6, %v314_v39  ;;  %v469_v18 = vcombine.low %v246_v31, %v253_v5  ;;  %v1894_v4 = vcombine.high %v4728_v7, %v4777_v63  ;;  %v4208_v5 = vld [vmem:[%s5369_s1 + $0x170] sm:$0xff]  }
  0x52   :  { %v3740_v15 = vpack.i.b16 %v231_v60, %v316_v20  ;;  %v2203_v48 = vrot.slane %v3798_v32, %v4477_v43  ;;  %v276_v54 = vrot.slane %v262_v22, %v4477_v43  ;;  %v324_v52 = vunpack.i.h.s16 %v269_v29 }
  0x53   :  { %v3741_v1 = vpack.i.b16 %v269_v29, %v254_v34  ;;  %v467_v11 = vcombine.low %v207_v62, %v3738_v47  ;;  %v491_v59 = vrot.slane %v469_v18, %v4477_v43  ;;  %v277_v23 = vcombine.high %v269_v29, %v269_v29 }
  0x54   :  { %v468_v26 = vcombine.low %v3739_v36, %v3740_v15  ;;  %v2216_v61 = vcombine.high %v2189_v28, %v2203_v48  ;;  %v2215_v56 = vcombine.low %v2189_v28, %v2203_v48  ;;  %v3742_v57 = vpack.i.b16 %v276_v54, %v324_v52  ;;  %v4206_v28 = vld [vmem:[%s5369_s1 + $0x138] sm:$0xff]  }
  0x55   :  { %v326_v2 = vunpack.i.h.s16 %v276_v54  ;;  %v477_v55 = vrot.slane %v467_v11, %v4477_v43  ;;  %v1896_v7 = vcombine.high %v4784_v19, %v4791_v58  ;;  %v1910_v63 = vrot.slane %v1894_v4, %v4477_v43 }
  0x56   :  { %v484_v31 = vrot.slane %v468_v26, %v4477_v43  ;;  %v2267_v0 = vrot.slane %v2216_v61, %v4477_v43  ;;  %v4866_v62 = vrot.slane %v2215_v56, %v4477_v43  ;;  %v470_v3 = vcombine.low %v3741_v1, %v3742_v57 }
  0x57   :  { %v3743_v6 = vpack.i.b16 %v277_v23, %v326_v2  ;;  %v1924_v19 = vrot.slane %v1896_v7, %v4477_v43  ;;  %v1981_v58 = vunpack.i.h.s16 %v4837_v46  ;;  %v2148_v34 = vcombine.high %v1501_v33, %v4799_v30 }
  0x58   :  { %v499_v60 = vcombine.low %v477_v55, %v484_v31  ;;  %v2279_v13 = vcombine.low %v4847_v25, %v2267_v0  ;;  %v2275_v39 = vcombine.low %v4850_v49, %v4866_v62  ;;  %v498_v20 = vrot.slane %v470_v3, %v4477_v43 }
  0x59   :  { %v522_v22 = vrot.slane %v3743_v6, %v4477_v43  ;;  %v1926_v29 = vcombine.low %v1910_v63, %v1924_v19  ;;  %v2150_v27 = vcombine.high %v4809_v37, %v1669_v50  ;;  %v2152_v16 = vcombine.high %v4811_v41, %v4816_v35 }
  0x5a   :  { %v507_v32 = vrot.slane %v499_v60, %v4477_v43  ;;  %2877 = vmatprep.mubr.bf16.mxu1 %v2279_v13  ;;  %v500_v47 = vcombine.low %v491_v59, %v498_v20  ;;  %v2154_v33 = vcombine.high %v1845_v53, %v3792_v44  ;;  %v4898_v46 = vrot.slane %v2148_v34, %v4477_v43 }
  0x5b   :  { %2878 = vmatmul.mubr.bf16.vlgmr.msra.gmra.mxu1 %v2275_v39  ;;  %v4895_v30 = vpack.i.b16 %v1926_v29, %v1981_v58  ;;  %v4905_v10 = vrot.slane %v2150_v27, %v4477_v43  ;;  %v4908_v50 = vrot.slane %v2152_v16, %v4477_v43 }
  0x5c   :  { %3966 = vmatpush3.bf16.msra.mxu1 %v4206_v28  ;;  %v514_v36 = vrot.slane %v500_v47, %v4477_v43  ;;  %v4911_v24 = vrot.slane %v2154_v33, %v4477_v43 }
  0x5d   :  { %12 = vsyncpa [#allocation3], 0  ;;  %v529_v38 = vrot.slane %v522_v22, %v4477_v43  ;;  %3967 = vmatprep.subr.bf16.mxu1 %v4208_v5  ;;  %v4212_v53 = vld [vmem:[%s5369_s1 + $0x168] sm:$0xff]   ;;  %v2339_v37 = vrot.slane %v4895_v30, %v4477_v43  ;;  %v2280_v35 = vcombine.high %v4847_v25, %v2267_v0  ;;  %v2214_v44 = vcombine.high %v4898_v46, %v4905_v10  ;;  %v4216_v52 = vld [vmem:[%s5369_s1 + $0x160] sm:$0xff]   ;;  %s4307_s2 = smov [#allocation2]  }
  0x5e   :  { %v515_v41 = vcombine.low %v507_v32, %v514_v36  ;;  %v2218_v18 = vcombine.high %v4908_v50, %v4911_v24  ;;  %v4926_v4 = vrot.slane %v4596_v8, %v4477_v43  ;;  %v4214_v48 = vld [vmem:[%s5369_s1 + $0x128] sm:$0xff]   ;;  %v1435_v25 = vrot.slane %v4474_v42, 1  ;;  %v4218_v59 = vld [vmem:[%s5369_s1 + $0x120] sm:$0xff]   ;;  %v4220_v2 = vld [vmem:[%s5369_s1 + $0x158] sm:$0xff]   ;;  %s3721_s28 = sshll.u32 %s4307_s2, 4  ;;  %s3722_s28 = int_to_ptr.vmem [resolvable:$true] %s3721_s28 }
  0x5f   :  { %v2347_v15 = vcombine.high %v2339_v37, %v2339_v37  ;;  %v4932_v54 = vrot.slane %v2214_v44, %v4477_v43  ;;  %v4940_v1 = vrot.slane %v2339_v37, %v4477_v43  ;;  %v1436_v23 = vrot.slane %v4566_v17, 1  ;;  %v4234_v17 = vld [vmem:[%s5369_s1 + $0x1b8] sm:$0xff]   ;;  %v4235_v63 = vld [vmem:[%s5369_s1 + $0x1f0] sm:$0xff]   ;;  %v4238_v32 = vld [vmem:[%s5369_s1 + $0x1e8] sm:$0xff]   ;;  %p4286_p1 = scmp.lt.s32.totalorder %s3722_s28, %s3722_s28 }
  0x60   :  { %4078 = vmatprep.mubr.bf16.mxu0 %v515_v41  ;;  %3968 = vmatpush3.bf16.msra.mxu1 %v4210_v45  ;;  %v4943_v11 = vrot.slane %v2218_v18, %v4477_v43  ;;  %v1510_v42 = vcombine.high %v4926_v4, %v4926_v4  ;;  %v1597_v61 = vrot.slane %v1417_v51, %v4477_v43  ;;  %v4224_v5 = vld [vmem:[%s5369_s1 + $0x150] sm:$0xff]   ;;  %v4240_v37 = vld [vmem:[%s5369_s1 + $0x1a8] sm:$0xff]   ;;  %vm1304_vm0 = vcmask 516096  }
  0x61   :  { %4079 = vmatmul.mubr.bf16.gmra.mxu0 %v529_v38  ;;  %3969 = vmatprep.subr.bf16.mxu1 %v4212_v53  ;;  %v2369_v8 = vrot.slane %v2347_v15, %v4477_v43  ;;  %v1677_v56 = vrot.slane %v1435_v25, %v4477_v43  ;;  %v2276_v57 = vcombine.high %v4850_v49, %v4866_v62  ;;  %v4222_v62 = vld [vmem:[%s5369_s1 + $0x118] sm:$0xff]   ;;  %v4237_v13 = vld [vmem:[%s5369_s1 + $0x1b0] sm:$0xff]   ;;  %v4228_v38 = vld [vmem:[%s5369_s1 + $0x148] sm:$0xff]   ;;  %vm1299_vm1 = vcmask 523264  }
  0x62   :  { %2925 = vmatprep.mubr.bf16.mxu0 %v2280_v35  ;;  %v2281_v26 = vcombine.low %v4932_v54, %v4943_v11  ;;  %v1765_v55 = vrot.slane %v4601_v9, %v4477_v43  ;;  %v1853_v40 = vrot.slane %v1418_v14, %v4477_v43  ;;  %v1598_v49 = vcombine.high %v1597_v61, %v1597_v61  ;;  %v4226_v16 = vld [vmem:[%s5369_s1 + $0x110] sm:$0xff]   ;;  %v4241_v15 = vld [vmem:[%s5369_s1 + $0x1e0] sm:$0xff]  }
  0x63   :  { %2885 = vmatprep.mubr.bf16.mxu1 %v2369_v8  ;;  %v2379_v51 = vcombine.high %v2369_v8, %v2369_v8  ;;  %v1605_v31 = vrot.slane %v1597_v61, %v4477_v43  ;;  %v1678_v7 = vcombine.high %v1677_v56, %v1677_v56  ;;  %v1524_v9 = vrot.slane %v1510_v42, %v4477_v43  ;;  %v4244_v8 = vld [vmem:[%s5369_s1 + $0x1d8] sm:$0xff]  }
  0x64   :  { %3970 = vmatpush3.bf16.msra.mxu1 %v4214_v48  ;;  %v1766_v0 = vcombine.high %v1765_v55, %v1765_v55  ;;  %v1773_v12 = vrot.slane %v1765_v55, %v4477_v43  ;;  %v1854_v14 = vcombine.high %v1853_v40, %v1853_v40  ;;  %v1612_v28 = vrot.slane %v1598_v49, %v4477_v43  ;;  %v4236_v61 = vld [vmem:[%s5369_s1 + $0x238] sm:$0xff]   ;;  %v4249_v49 = vld [vmem:[%s5369_s1 + $0x190] sm:$0xff]  }
  0x65   :  { %3971 = vmatprep.subr.bf16.mxu1 %v4216_v52  ;;  %2886 = vmatmul.mubr.bf16.gmra.mxu1 %v4940_v1  ;;  %v1692_v3 = vrot.slane %v1678_v7, %v4477_v43  ;;  %v4983_v6 = vrot.slane %v1436_v23, %v4477_v43  ;;  %v1958_v60 = vunpack.i.h.s16 %v1605_v31  ;;  %v2332_v39 = vcombine.high %v4895_v30, %v4895_v30 }
  0x66   :  { %2973 = vmatprep.mubr.bf16.mxu1 %v2281_v26  ;;  %v1780_v19 = vrot.slane %v1766_v0, %v4477_v43  ;;  %v1868_v58 = vrot.slane %v1854_v14, %v4477_v43  ;;  %v1970_v34 = vunpack.i.h.s16 %v1773_v12  ;;  %v1517_v22 = vrot.slane %v4926_v4, %v4477_v43  ;;  %v4230_v4 = vld [vmem:[%s5369_s1 + $0x108] sm:$0xff]   ;;  %v4253_v14 = vld [vmem:[%s5369_s1 + $0x1c0] sm:$0xff]  }
  0x67   :  { %v4997_v20 = vrot.slane %v4983_v6, %v4477_v43  ;;  %v1685_v29 = vrot.slane %v1677_v56, %v4477_v43  ;;  %v1861_v47 = vrot.slane %v1853_v40, %v4477_v43  ;;  %v3785_v27 = vpack.i.b16 %v1605_v31, %v1524_v9  ;;  %v4246_v56 = vld [vmem:[%s5369_s1 + $0x198] sm:$0xff]   ;;  %v4250_v31 = vld [vmem:[%s5369_s1 + $0x1c8] sm:$0xff]  }
  0x68   :  { %3972 = vmatpush3.bf16.msra.mxu1 %v4218_v59  ;;  %v3787_v33 = vpack.i.b16 %v1612_v28, %v1958_v60  ;;  %v3789_v30 = vpack.i.b16 %v1773_v12, %v1692_v3  ;;  %v3791_v36 = vpack.i.b16 %v1780_v19, %v1970_v34  ;;  %v2377_v53 = vcombine.high %v4940_v1, %v4940_v1  ;;  %v4242_v9 = vld [vmem:[%s5369_s1 + $0x228] sm:$0xff]   ;;  %v4245_v28 = vld [vmem:[%s5369_s1 + $0x220] sm:$0xff]   ;;  %v4248_v60 = vld [vmem:[%s5369_s1 + $0x218] sm:$0xff]  }
  0x69   :  { %3973 = vmatprep.subr.bf16.mxu1 %v4220_v2  ;;  %2926 = vmatmul.mubr.bf16.vlgmr.msra.gmra.mxu0 %v2276_v57  ;;  %v3793_v45 = vpack.i.b16 %v4997_v20, %v1868_v58  ;;  %v2282_v41 = vcombine.high %v4932_v54, %v4943_v11  ;;  %v2213_v35 = vcombine.low %v4898_v46, %v4905_v10  ;;  %v4231_v46 = vld [vmem:[%s5369_s1 + $0x140] sm:$0xff]   ;;  %v4247_v2 = vld [vmem:[%s5369_s1 + $0x1d0] sm:$0xff]   ;;  %v4252_v0 = vld [vmem:[%s5369_s1 + $0x188] sm:$0xff]   ;;  %vm3359_vm2 = vcmask 1041409  }
  0x6a   :  { %3994 = vmatpush3.bf16.msra.mxu0 %v4234_v17  ;;  %2933 = vmatprep.mubr.bf16.mxu0 %v2379_v51  ;;  %v2217_v44 = vcombine.low %v4908_v50, %v4911_v24  ;;  %v2346_v18 = vrot.slane %v2332_v39, %v4477_v43  ;;  %v2283_v48 = vcombine.low %v1517_v22, %v3785_v27  ;;  %v4243_v10 = vld [vmem:[%s5369_s1 + $0x1a0] sm:$0xff]   ;;  %v4239_v51 = vld [vmem:[%s5369_s1 + $0x230] sm:$0xff]   ;;  %v1982_v39 = vunpack.i.h.s16 %v4997_v20 }
  0x6b   :  { %3995 = vmatprep.subr.bf16.mxu0 %v4235_v63  ;;  %v2284_v54 = vcombine.low %v3787_v33, %v1685_v29  ;;  %v2285_v25 = vcombine.low %v3789_v30, %v3791_v36  ;;  %v2286_v52 = vcombine.low %v1861_v47, %v3793_v45  ;;  %v2232_v50 = vrot.slane %v2213_v35, %v4477_v43  ;;  %v4233_v11 = vld [vmem:[%s5369_s1 + $0x100] sm:$0xff]   ;;  %v4251_v34 = vld [vmem:[%s5369_s1 + $0x210] sm:$0xff]   ;;  %v4257_v45 = vld [vmem:[%s5371_s3 + $0x38] sm:$0xff]  }
  0x6c   :  { %3974 = vmatpush3.bf16.msra.mxu1 %v4222_v62  ;;  %v2260_v24 = vrot.slane %v2217_v44, %v4477_v43  ;;  %v2348_v1 = vcombine.high %v2346_v18, %v2346_v18  ;;  %v2293_v26 = vrot.slane %v2283_v48, %v4477_v43  ;;  %v2362_v12 = vrot.slane %v2346_v18, %v4477_v43  ;;  %v4255_v3 = vld [vmem:[%s5369_s1 + $0x180] sm:$0xff]   ;;  %v4258_v35 = vld [vmem:[%s5371_s3 + $0x30] sm:$0xff]  }
  0x6d   :  { %3975 = vmatprep.subr.bf16.mxu1 %v4224_v5  ;;  %v2300_v42 = vrot.slane %v2284_v54, %v4477_v43  ;;  %v2307_v59 = vrot.slane %v2285_v25, %v4477_v43  ;;  %v2314_v23 = vrot.slane %v2286_v52, %v4477_v43  ;;  %v1934_v58 = vcombine.high %v4983_v6, %v4983_v6  ;;  %v4256_v29 = vld [vmem:[%s5369_s1 + $0x200] sm:$0xff]   ;;  %v4259_v54 = vld [vmem:[%s5371_s3 + $0x28] sm:$0xff]  }
  0x6e   :  { %3996 = vmatpush3.bf16.msra.mxu0 %v4237_v13  ;;  %v2277_v57 = vcombine.low %v2232_v50, %v2260_v24  ;;  %v2376_v55 = vrot.slane %v2348_v1, %v4477_v43  ;;  %v2278_v5 = vcombine.high %v2232_v50, %v2260_v24  ;;  %v2378_v22 = vcombine.high %v2362_v12, %v2362_v12 }
  0x6f   :  { %3997 = vmatprep.subr.bf16.mxu0 %v4238_v32  ;;  %v2315_v40 = vcombine.low %v2293_v26, %v2300_v42  ;;  %v2316_v17 = vcombine.low %v2307_v59, %v2314_v23  ;;  %v1948_v13 = vrot.slane %v1934_v58, %v4477_v43  ;;  %v4254_v32 = vld [vmem:[%s5369_s1 + $0x208] sm:$0xff]   ;;  %vm4305_vm3 = vmmov 0  }
  0x70   :  { %3976 = vmatpush3.bf16.msra.mxu1 %v4226_v16  ;;  %v2380_v19 = vcombine.high %v2376_v55, %v2376_v55 }
  0x71   :  { %3977 = vmatprep.subr.bf16.mxu1 %v4228_v38  ;;  %2934 = vmatmul.mubr.bf16.gmra.mxu0 %v2377_v53  ;;  %v2323_v7 = vrot.slane %v2315_v40, %v4477_v43  ;;  %v2330_v63 = vrot.slane %v2316_v17, %v4477_v43  ;;  %v3795_v6 = vpack.i.b16 %v1948_v13, %v1982_v39 }
  0x72   :  { %3998 = vmatpush3.bf16.msra.mxu0 %v4240_v37  ;;  %3021 = vmatprep.mubr.bf16.mxu0 %v2282_v41  ;;  %v4304_v37 = vmov 0.0  }
  0x73   :  { %3999 = vmatprep.subr.bf16.mxu0 %v4241_v15  ;;  %v2331_v62 = vcombine.low %v2323_v7, %v2330_v63  ;;  %v2387_v47 = vrot.slane %v3795_v6, %v4477_v43 }
  0x74   :  { %3978 = vmatpush3.bf16.msra.mxu1 %v4230_v4 }
  0x75   :  { %3979 = vmatprep.subr.bf16.mxu1 %v4231_v46  ;;  %v2394_v20 = vrot.slane %v2387_v47, %v4477_v43 }
  0x76   :  { %4000 = vmatpush3.bf16.msra.mxu0 %v4243_v10 }
  0x77   :  { %4001 = vmatprep.subr.bf16.mxu0 %v4244_v8  ;;  %v4260_v8 = vld [vmem:[%s5371_s3 + $0x20] sm:$0xff]  }
  0x78   :  { %3980 = vmatpush3.bf16.msra.mxu1 %v4233_v11 }
  0x79   :  { %4082 = vmatprep.subr.bf16.mxu1 %v4236_v61 }
  0x7a   :  { %4002 = vmatpush3.bf16.msra.mxu0 %v4246_v56 }
  0x7b   :  { %2974 = vmatmul.mubr.bf16.vlgmr.msra.gmra.mxu1 %v2277_v57  ;;  %4003 = vmatprep.subr.bf16.mxu0 %v4247_v2 }
  0x7c   :  { %4083 = vmatpush3.bf16.msra.mxu1 %v4236_v61  ;;  %2981 = vmatprep.mubr.bf16.mxu1 %v2376_v55 }
  0x7d   :  { %4084 = vmatprep.subr.bf16.mxu1 %v4239_v51 }
  0x7e   :  { %4004 = vmatpush3.bf16.msra.mxu0 %v4249_v49 }
  0x7f   :  { %4005 = vmatprep.subr.bf16.mxu0 %v4250_v31 }
  0x80   :  { %4085 = vmatpush3.bf16.msra.mxu1 %v4239_v51  ;;  %v4261_v51 = vld [vmem:[%s5371_s3 + $0x18] sm:$0xff]  }
  0x81   :  { %4086 = vmatprep.subr.bf16.mxu1 %v4242_v9 }
  0x82   :  { %4006 = vmatpush3.bf16.msra.mxu0 %v4252_v0 }
  0x83   :  { %2982 = vmatmul.mubr.bf16.gmra.mxu1 %v2362_v12  ;;  %4007 = vmatprep.subr.bf16.mxu0 %v4253_v14 }
  0x84   :  { %4087 = vmatpush3.bf16.msra.mxu1 %v4242_v9  ;;  %4098 = vmatprep.mubr.bf16.mxu1 %v2331_v62 }
  0x85   :  { %4088 = vmatprep.subr.bf16.mxu1 %v4245_v28 }
  0x86   :  { %4008 = vmatpush3.bf16.msra.mxu0 %v4255_v3 }
  0x87   :  { %4102 = vmatprep.subr.bf16.mxu0 %v4304_v37 }
  0x88   :  { %4089 = vmatpush3.bf16.msra.mxu1 %v4245_v28 }
  0x89   :  { %4090 = vmatprep.subr.bf16.mxu1 %v4248_v60  ;;  %3022 = vmatmul.mubr.bf16.vlgmr.msra.gmra.mxu0 %v2278_v5 }
  0x8a   :  { %3029 = vmatprep.mubr.bf16.mxu0 %v2380_v19  ;;  %4103 = vmatpush3.bf16.msra.mxu0 %v4257_v45 }
  0x8b   :  { %4104 = vmatprep.subr.bf16.mxu0 %v4304_v37 }
  0x8c   :  { %4091 = vmatpush3.bf16.msra.mxu1 %v4248_v60 }
  0x8d   :  { %4092 = vmatprep.subr.bf16.mxu1 %v4251_v34 }
  0x8e   :  { %4105 = vmatpush3.bf16.msra.mxu0 %v4258_v35 }
  0x8f   :  { %4106 = vmatprep.subr.bf16.mxu0 %v4304_v37 }
  0x90   :  { %4093 = vmatpush3.bf16.msra.mxu1 %v4251_v34 }
  0x91   :  { %4094 = vmatprep.subr.bf16.mxu1 %v4254_v32  ;;  %3030 = vmatmul.mubr.bf16.gmra.mxu0 %v2378_v22 }
  0x92   :  { %4107 = vmatpush3.bf16.msra.mxu0 %v4259_v54  ;;  %4118 = vmatprep.mubr.msk.bf16.mxu0 %vm4305_vm3, %v4304_v37 }
  0x93   :  { %4108 = vmatprep.subr.bf16.mxu0 %v4304_v37 }
  0x94   :  { %4095 = vmatpush3.bf16.msra.mxu1 %v4254_v32 }
  0x95   :  { %4096 = vmatprep.subr.bf16.mxu1 %v4256_v29 }
  0x96   :  { %4109 = vmatpush3.bf16.msra.mxu0 %v4260_v8 }
  0x97   :  { %4110 = vmatprep.subr.bf16.mxu0 %v4304_v37 }
  0x98   :  { %4097 = vmatpush3.bf16.msra.mxu1 %v4256_v29 }
  0x99   :  { %4122 = vmatprep.subr.bf16.mxu1 %v4304_v37 }
  0x9a   :  { %4111 = vmatpush3.bf16.msra.mxu0 %v4261_v51 }
  0x9b   :  { %4099 = vmatmul.mubr.bf16.vlgmr.msra.gmra.mxu1 %v2394_v20  ;;  %4112 = vmatprep.subr.bf16.mxu0 %v4304_v37 }
  0x9c   :  { %4138 = vmatprep.mubr.msk.bf16.mxu1 %vm4305_vm3, %v4304_v37 }
  0xef   :  { %v4076_v27 = vpop.f32.mrf.mxu0 }
  0xf0   :  { %v751_v38 = vcombine.high %v4076_v27, %v4076_v27  ;;  %v758_v44 = vrot.slane %v4076_v27, %v4477_v43 }
  0xf1   :  { %v616_v16 = vpop.f32.mrf.mxu0 }
  0xf2   :  { %v653_v53 = vcombine.high %v616_v16, %v616_v16  ;;  %v765_v15 = vrot.slane %v751_v38, %v4477_v43  ;;  %v660_v25 = vrot.slane %v616_v16, %v4477_v43  ;;  %v766_v52 = vcombine.high %v758_v44, %v758_v44 }
  0xf3   :  { %v4077_v33 = vpop.f32.mrf.mxu0  ;;  %v774_v23 = vrot.slane %v758_v44, %v4477_v43 }
  0xf4   :  { %v667_v4 = vrot.slane %v653_v53, %v4477_v43  ;;  %v767_v46 = vcombine.high %v765_v15, %v765_v15  ;;  %v668_v1 = vcombine.high %v660_v25, %v660_v25  ;;  %v788_v11 = vrot.slane %v766_v52, %v4477_v43 }
  0xf5   :  { %v619_v30 = vpop.f32.mrf.mxu0  ;;  %v781_v61 = vrot.slane %v765_v15, %v4477_v43  ;;  %v807_v57 = vrot.slane %v4077_v33, %v4477_v43  ;;  %v800_v2 = vcombine.high %v4077_v33, %v4077_v33  ;;  %v676_v49 = vrot.slane %v660_v25, %v4477_v43 }
  0xf6   :  { %v702_v36 = vcombine.high %v619_v30, %v619_v30  ;;  %v709_v18 = vrot.slane %v619_v30, %v4477_v43  ;;  %v669_v50 = vcombine.high %v667_v4, %v667_v4  ;;  %v795_v26 = vrot.slane %v767_v46, %v4477_v43 }
  0xf7   :  { %v683_v31 = vrot.slane %v667_v4, %v4477_v43  ;;  %v690_v7 = vrot.slane %v668_v1, %v4477_v43  ;;  %v1067_v63 = vcombine.low %v774_v23, %v788_v11  ;;  %v815_v3 = vcombine.high %v807_v57, %v807_v57 }
  0xf8   :  { %v716_v41 = vrot.slane %v702_v36, %v4477_v43  ;;  %v717_v10 = vcombine.high %v709_v18, %v709_v18  ;;  %v697_v56 = vrot.slane %v669_v50, %v4477_v43  ;;  %v725_v55 = vrot.slane %v709_v18, %v4477_v43 }
  0xf9   :  { %v1069_v9 = vcombine.low %v781_v61, %v795_v26  ;;  %v3757_v14 = vcombine.high %v781_v61, %v795_v26  ;;  %v3756_v60 = vcombine.high %v774_v23, %v788_v11  ;;  %v814_v5 = vrot.slane %v800_v2, %v4477_v43 }
  0xfa   :  { %v718_v48 = vcombine.high %v716_v41, %v716_v41  ;;  %v732_v42 = vrot.slane %v716_v41, %v4477_v43  ;;  %v739_v59 = vrot.slane %v717_v10, %v4477_v43  ;;  %v971_v62 = vcombine.low %v683_v31, %v697_v56 }
  0xfb   :  { %v3753_v28 = vcombine.high %v683_v31, %v697_v56  ;;  %v969_v34 = vcombine.low %v676_v49, %v690_v7  ;;  %v3752_v13 = vcombine.high %v676_v49, %v690_v7  ;;  %v1091_v39 = vrot.slane %v1069_v9, %v4477_v43 }
  0xfc   :  { %v746_v24 = vrot.slane %v718_v48, %v4477_v43  ;;  %v1018_v0 = vcombine.low %v725_v55, %v739_v59  ;;  %v3754_v12 = vcombine.high %v725_v55, %v739_v59  ;;  %v1098_v6 = vrot.slane %v3757_v14, %v4477_v43 }
  0xfd   :  { %v993_v29 = vrot.slane %v971_v62, %v4477_v43  ;;  %v1000_v47 = vrot.slane %v3753_v28, %v4477_v43  ;;  %v837_v20 = vrot.slane %v815_v3, %v4477_v43  ;;  %v1077_v27 = vrot.slane %v1067_v63, %v4477_v43 }
  0xfe   :  { %v1020_v40 = vcombine.low %v732_v42, %v746_v24  ;;  %v3755_v17 = vcombine.high %v732_v42, %v746_v24  ;;  %v1028_v32 = vrot.slane %v1018_v0, %v4477_v43  ;;  %v1035_v22 = vrot.slane %v3754_v12, %v4477_v43 }
  0xff   :  { %v1084_v16 = vrot.slane %v3756_v60, %v4477_v43  ;;  %v816_v33 = vcombine.high %v814_v5, %v814_v5  ;;  %v979_v36 = vrot.slane %v969_v34, %v4477_v43  ;;  %v986_v45 = vrot.slane %v3752_v13, %v4477_v43 }
 0x100   :  { %v1042_v19 = vrot.slane %v1020_v40, %v4477_v43  ;;  %v1049_v58 = vrot.slane %v3755_v17, %v4477_v43  ;;  %v823_v38 = vrot.slane %v807_v57, %v4477_v43  ;;  %v830_v53 = vrot.slane %v814_v5, %v4477_v43 }
 0x101   :  { %v1050_v41 = vcombine.low %v1028_v32, %v1035_v22  ;;  %v1100_v35 = vcombine.low %v1091_v39, %v1098_v6  ;;  %v1002_v44 = vcombine.low %v993_v29, %v1000_v47  ;;  %v847_v15 = vcombine.high %v837_v20, %v837_v20 }
 0x102   :  { %v1051_v30 = vcombine.low %v1042_v19, %v1049_v58  ;;  %v1099_v4 = vcombine.low %v1077_v27, %v1084_v16  ;;  %v1001_v54 = vcombine.low %v979_v36, %v986_v45  ;;  %v844_v25 = vrot.slane %v816_v33, %v4477_v43 }
 0x103   :  { %v845_v52 = vcombine.high %v823_v38, %v823_v38  ;;  %v846_v46 = vcombine.high %v830_v53, %v830_v53  ;;  %v1122_v50 = vrot.slane %v823_v38, %v4477_v43  ;;  %v1058_v24 = vrot.slane %v1050_v41, %v4477_v43 }
 0x104   :  { %v1065_v48 = vrot.slane %v1051_v30, %v4477_v43  ;;  %v1114_v1 = vrot.slane %v1100_v35, %v4477_v43  ;;  %v1016_v11 = vrot.slane %v1002_v44, %v4477_v43  ;;  %v1131_v26 = vcombine.low %v847_v15, %v830_v53 }
 0x105   :  { %v1107_v23 = vrot.slane %v1099_v4, %v4477_v43  ;;  %v1009_v61 = vrot.slane %v1001_v54, %v4477_v43  ;;  %v1130_v56 = vcombine.low %v837_v20, %v845_v52  ;;  %v5171_v57 = vcombine.low %v844_v25, %v846_v46 }
 0x106   :  { %v1066_v59 = vcombine.low %v1058_v24, %v1065_v48  ;;  %v1129_v40 = vrot.slane %v1122_v50, %v4477_v43  ;;  %v1147_v31 = vrot.slane %v1131_v26, %v4477_v43  ;;  %v848_v62 = vcombine.high %v844_v25, %v844_v25 }
 0x107   :  { %v1115_v51 = vcombine.low %v1107_v23, %v1114_v1  ;;  %v1017_v49 = vcombine.low %v1009_v61, %v1016_v11  ;;  %v1140_v14 = vrot.slane %v1130_v56, %v4477_v43  ;;  %v1154_v28 = vrot.slane %v5171_v57, %v4477_v43 }
 0x108   :  { %v1301_v12 = vsel %vm1299_vm1, %v1066_v59, -inf  ;;  %v1305_v5 = vsel %vm1304_vm0, %v1129_v40, -inf }
 0x109   :  { %v5188_v13 = vcombine.low %v1140_v14, %v1147_v31  ;;  %v1300_v22 = vsel %vm1299_vm1, %v1017_v49, -inf  ;;  %v1302_v6 = vsel %vm1299_vm1, %v1115_v51, -inf  ;;  %v1306_v29 = vmax.f32 %v1301_v12, %v1305_v5 }
 0x10a   :  { %v1303_v15 = vmax.f32 %v1300_v22, %v1302_v6 }
 0x10c   :  { %v1307_v24 = vmax.f32 %v1303_v15, %v1306_v29 }
 0x11b   :  { %v3925_v18 = vpop.f32.mrf.mxu1 }
 0x11d   :  { %v3926_v10 = vpop.f32.mrf.mxu1 }
 0x11e   :  { %v5165_v8 = vadd.f32 %v3926_v10, %v3925_v18 }
 0x11f   :  { %v3928_v42 = vpop.f32.mrf.mxu1 }
 0x121   :  { %v4080_v2 = vpop.f32.mrf.mxu0  ;;  %v3929_v55 = vpop.f32.mrf.mxu1 }
 0x122   :  { %v5174_v17 = vadd.f32 %v3929_v55, %v3928_v42  ;;  %v5178_v63 = vrot.slane %v4080_v2, %v4477_v43 }
 0x123   :  { %v632_v7 = vpop.f32.mrf.mxu0 }
 0x124   :  { %v849_v9 = vcombine.high %v632_v7, %v632_v7  ;;  %v856_v0 = vrot.slane %v632_v7, %v4477_v43  ;;  %v954_v47 = vcombine.high %v5178_v63, %v5178_v63  ;;  %v961_v46 = vrot.slane %v5178_v63, %v4477_v43 }
 0x125   :  { %v4081_v3 = vpop.f32.mrf.mxu0  ;;  %v3931_v60 = vpop.f32.mrf.mxu1 }
 0x126   :  { %v863_v19 = vrot.slane %v849_v9, %v4477_v43  ;;  %v864_v58 = vcombine.high %v856_v0, %v856_v0  ;;  %v872_v34 = vrot.slane %v856_v0, %v4477_v43  ;;  %v968_v1 = vrot.slane %v954_v47, %v4477_v43 }
 0x127   :  { %v635_v39 = vpop.f32.mrf.mxu0  ;;  %v3932_v32 = vpop.f32.mrf.mxu1 }
 0x128   :  { %v865_v20 = vcombine.high %v863_v19, %v863_v19  ;;  %v879_v27 = vrot.slane %v863_v19, %v4477_v43  ;;  %v886_v16 = vrot.slane %v864_v58, %v4477_v43  ;;  %v894_v33 = vcombine.high %v872_v34, %v872_v34 }
 0x129   :  { %v1133_v30 = vcombine.low %v848_v62, %v872_v34  ;;  %v898_v36 = vcombine.high %v635_v39, %v635_v39  ;;  %v905_v45 = vrot.slane %v635_v39, %v4477_v43  ;;  %v3934_v38 = vpop.f32.mrf.mxu1  ;;  %v3953_v53 = vpop.f32.mrf.mxu0  ;;  %v3933_v9 = vadd.f32 %v3932_v32, %v3931_v60 }
 0x12a   :  { %v893_v41 = vrot.slane %v865_v20, %v4477_v43  ;;  %v895_v35 = vcombine.high %v879_v27, %v879_v27  ;;  %v896_v44 = vcombine.high %v886_v16, %v886_v16  ;;  %v1179_v4 = vcombine.low %v886_v16, %v894_v33 }
 0x12b   :  { %v1161_v18 = vrot.slane %v1133_v30, %v4477_v43  ;;  %v912_v48 = vrot.slane %v898_v36, %v4477_v43  ;;  %v913_v54 = vcombine.high %v905_v45, %v905_v45  ;;  %v3935_v25 = vpop.f32.mrf.mxu1  ;;  %v3954_v52 = vpop.f32.mrf.mxu0  ;;  %v921_v42 = vrot.slane %v905_v45, %v4477_v43 }
 0x12c   :  { %v1180_v10 = vcombine.low %v896_v44, %v879_v27  ;;  %v897_v50 = vcombine.high %v893_v41, %v893_v41  ;;  %v1181_v11 = vcombine.low %v893_v41, %v895_v35  ;;  %v1189_v23 = vrot.slane %v1179_v4, %v4477_v43 }
 0x12d   :  { %v914_v26 = vcombine.high %v912_v48, %v912_v48  ;;  %v3956_v59 = vpop.f32.mrf.mxu0  ;;  %v928_v56 = vrot.slane %v912_v48, %v4477_v43  ;;  %v935_v57 = vrot.slane %v913_v54, %v4477_v43  ;;  %v1163_v2 = vcombine.low %v1154_v28, %v1161_v18 }
 0x12e   :  { %v1196_v61 = vrot.slane %v1180_v10, %v4477_v43  ;;  %v943_v40 = vcombine.high %v921_v42, %v921_v42  ;;  %v1182_v51 = vcombine.low %v897_v50, %v921_v42  ;;  %v1203_v12 = vrot.slane %v1181_v11, %v4477_v43 }
 0x12f   :  { %v942_v55 = vrot.slane %v914_v26, %v4477_v43  ;;  %v3957_v49 = vpop.f32.mrf.mxu0  ;;  %v944_v7 = vcombine.high %v928_v56, %v928_v56  ;;  %v945_v63 = vcombine.high %v935_v57, %v935_v57  ;;  %v1283_v5 = vrot.slane %v968_v1, %v4477_v43 }
 0x130   :  { %v1211_v31 = vcombine.low %v1189_v23, %v1196_v61  ;;  %v1210_v14 = vrot.slane %v1182_v51, %v4477_v43  ;;  %v1228_v62 = vcombine.low %v935_v57, %v943_v40  ;;  %v3955_v58 = vadd.f32 %v3954_v52, %v3953_v53 }
 0x131   :  { %v946_v0 = vcombine.high %v942_v55, %v942_v55  ;;  %v3959_v3 = vpop.f32.mrf.mxu0  ;;  %v1229_v19 = vcombine.low %v945_v63, %v928_v56  ;;  %v1230_v28 = vcombine.low %v942_v55, %v944_v7  ;;  %v1177_v34 = vrot.slane %v1163_v2, %v4477_v43 }
 0x132   :  { %v1219_v39 = vrot.slane %v1211_v31, %v4477_v43  ;;  %v1212_v22 = vcombine.low %v1203_v12, %v1210_v14  ;;  %v1238_v60 = vrot.slane %v1228_v62, %v4477_v43  ;;  %v2928_v47 = vadd.f32 %v3955_v58, %v5165_v8  ;;  %v4264_v58 = vld [vmem:[%s5371_s3] sm:$0xff]  }
 0x133   :  { %v1231_v6 = vcombine.low %v946_v0, %v961_v46  ;;  %v3960_v29 = vpop.f32.mrf.mxu0  ;;  %v1245_v32 = vrot.slane %v1229_v19, %v4477_v43  ;;  %v3958_v20 = vadd.f32 %v3957_v49, %v3956_v59  ;;  %v1252_v16 = vrot.slane %v1230_v28, %v4477_v43  ;;  %v4263_v0 = vld [vmem:[%s5371_s3 + $0x8] sm:$0xff]  }
 0x134   :  { %v1226_v27 = vrot.slane %v1212_v22, %v4477_v43  ;;  %v3961_v30 = vadd.f32 %v3960_v29, %v3959_v3  ;;  %v1170_v53 = vrot.slane %v5188_v13, %v4477_v43  ;;  %v1308_v8 = vrot.slane %v1307_v24, 4 }
 0x135   :  { %v1259_v33 = vrot.slane %v1231_v6, %v4477_v43  ;;  %v3962_v36 = vpop.f32.mrf.mxu0  ;;  %v1260_v45 = vcombine.low %v1238_v60, %v1245_v32  ;;  %v2931_v38 = vadd.f32 %v3958_v20, %v5174_v17  ;;  %v1290_v18 = vrot.slane %v1283_v5, %v4477_v43  ;;  %v4265_v60 = vld [vmem:[%s5372_s4 + $0x38] sm:$0xff]  }
 0x136   :  { %v1227_v41 = vcombine.low %v1219_v39, %v1226_v27  ;;  %v2936_v44 = vadd.f32 %v3961_v30, %v3933_v9  ;;  %v1178_v4 = vcombine.low %v1170_v53, %v1177_v34  ;;  %v1309_v17 = vmax.f32 %v1307_v24, %v1308_v8  ;;  %v4262_v24 = vld [vmem:[%s5371_s3 + $0x10] sm:$0xff]   ;;  %s4306_s3 = smov 64   ;;  %4123 = vmatpush3.bf16.msra.mxu1 %v4265_v60  ;;  %v4269_v8 = vld [vmem:[%s5372_s4 + $0x18] sm:$0xff]  }
 0x137   :  { %v1261_v35 = vcombine.low %v1252_v16, %v1259_v33  ;;  %v3963_v15 = vpop.f32.mrf.mxu0  ;;  %v1268_v48 = vrot.slane %v1260_v45, %v4477_v43  ;;  %v1318_v10 = vsel %vm1304_vm0, %v1290_v18, -inf  ;;  %4113 = vmatpush3.bf16.msra.mxu0 %v4262_v24  ;;  %v4266_v27 = vld [vmem:[%s5372_s4 + $0x30] sm:$0xff]   ;;  %4124 = vmatprep.subr.bf16.mxu1 %v4304_v37  ;;  %v4267_v45 = vld [vmem:[%s5372_s4 + $0x28] sm:$0xff]  }
 0x138   :  { %v1315_v46 = vsel %vm1299_vm1, %v1227_v41, -inf  ;;  %v1314_v13 = vsel %vm1299_vm1, %v1178_v4, -inf  ;;  %v1310_v23 = vrot.slane %v1309_v17, 2  ;;  %4114 = vmatprep.subr.bf16.mxu0 %v4304_v37 }
 0x139   :  { %v1275_v54 = vrot.slane %v1261_v35, %v4477_v43  ;;  %v1319_v26 = vmax.f32 %v1315_v46, %v1318_v10 }
 0x13a   :  { %v1311_v51 = vmax.f32 %v1309_v17, %v1310_v23  ;;  %4125 = vmatpush3.bf16.msra.mxu1 %v4266_v27 }
 0x13b   :  { %v1276_v25 = vcombine.low %v1268_v48, %v1275_v54  ;;  %v3981_v52 = vpop.f32.mrf.mxu1  ;;  %4115 = vmatpush3.bf16.msra.mxu0 %v4263_v0  ;;  %4126 = vmatprep.subr.bf16.mxu1 %v4304_v37 }
 0x13c   :  { %v1312_v14 = vrot.slane %v1311_v51, 1  ;;  %4116 = vmatprep.subr.bf16.mxu0 %v4304_v37 }
 0x13d   :  { %v1316_v50 = vsel %vm1299_vm1, %v1276_v25, -inf  ;;  %v3982_v1 = vpop.f32.mrf.mxu1  ;;  %v4270_v25 = vld [vmem:[%s5372_s4 + $0x10] sm:$0xff]  }
 0x13e   :  { %v1317_v11 = vmax.f32 %v1314_v13, %v1316_v50  ;;  %v3983_v42 = vadd.f32 %v3982_v1, %v3981_v52  ;;  %v1313_v39 = vmax.f32 %v1311_v51, %v1312_v14  ;;  %4127 = vmatpush3.bf16.msra.mxu1 %v4267_v45 }
 0x13f   :  { %v3984_v59 = vpop.f32.mrf.mxu1  ;;  %4117 = vmatpush3.bf16.msra.mxu0 %v4264_v58  ;;  %4128 = vmatprep.subr.bf16.mxu1 %v4304_v37 }
 0x140   :  { %v1320_v61 = vmax.f32 %v1317_v11, %v1319_v26  ;;  %v2976_v56 = vadd.f32 %v3983_v42, %v2928_v47  ;;  %4142 = vmatprep.subr.bf16.mxu0 %v4304_v37 }
 0x141   :  { %v3985_v57 = vpop.f32.mrf.mxu1 }
 0x142   :  { %v1321_v2 = vrot.slane %v1320_v61, 4  ;;  %v3986_v55 = vadd.f32 %v3985_v57, %v3984_v59 }
 0x143   :  { %v3987_v40 = vpop.f32.mrf.mxu1 }
 0x144   :  { %v1322_v49 = vmax.f32 %v1320_v61, %v1321_v2  ;;  %v2979_v31 = vadd.f32 %v3986_v55, %v2931_v38 }
 0x145   :  { %v3988_v7 = vpop.f32.mrf.mxu1 }
 0x146   :  { %v1323_v63 = vrot.slane %v1322_v49, 2  ;;  %v3989_v9 = vadd.f32 %v3988_v7, %v3987_v40 }
 0x147   :  { %v3990_v12 = vpop.f32.mrf.mxu1 }
 0x148   :  { %v1324_v62 = vmax.f32 %v1322_v49, %v1323_v63  ;;  %v2984_v3 = vadd.f32 %v3989_v9, %v2936_v44  ;;  %v4268_v44 = vld [vmem:[%s5372_s4 + $0x20] sm:$0xff]  }
 0x149   :  { %v4009_v5 = vpop.f32.mrf.mxu0  ;;  %v3991_v19 = vpop.f32.mrf.mxu1  ;;  %4129 = vmatpush3.bf16.msra.mxu1 %v4268_v44 }
 0x14a   :  { %v1325_v28 = vrot.slane %v1324_v62, 1  ;;  %4130 = vmatprep.subr.bf16.mxu1 %v4304_v37 }
 0x14b   :  { %v4010_v34 = vpop.f32.mrf.mxu0 }
 0x14c   :  { %v1326_v22 = vmax.f32 %v1324_v62, %v1325_v28  ;;  %v4011_v6 = vadd.f32 %v4010_v34, %v4009_v5 }
 0x14d   :  { %v4012_v29 = vpop.f32.mrf.mxu0  ;;  %4131 = vmatpush3.bf16.msra.mxu1 %v4269_v8 }
 0x14e   :  { %v3364_v32 = vsel %vm3359_vm2, %v1326_v22, %v1313_v39  ;;  %v3024_v47 = vadd.f32 %v4011_v6, %v2976_v56  ;;  %4132 = vmatprep.subr.bf16.mxu1 %v4304_v37 }
 0x14f   :  { %3365 = vrot.lane.b32.xlu0 %v3364_v32, %s4306_s3  ;;  %v4013_v20 = vpop.f32.mrf.mxu0 }
 0x150   :  { %v4014_v16 = vadd.f32 %v4013_v20, %v4012_v29 }
 0x151   :  { %v4015_v33 = vpop.f32.mrf.mxu0  ;;  %4133 = vmatpush3.bf16.msra.mxu1 %v4270_v25 }
 0x152   :  { %v3027_v30 = vadd.f32 %v4014_v16, %v2979_v31  ;;  %4134 = vmatprep.subr.bf16.mxu1 %v4304_v37 }
 0x153   :  { %v4016_v36 = vpop.f32.mrf.mxu0 }
 0x154   :  { %v4017_v38 = vadd.f32 %v4016_v36, %v4015_v33 }
 0x155   :  { %v4018_v53 = vpop.f32.mrf.mxu0 }
 0x156   :  { %v3032_v41 = vadd.f32 %v4017_v38, %v2984_v3 }
 0x157   :  { %v4019_v35 = vpop.f32.mrf.mxu0 }
 0x15b   :  { %v4100_v15 = vpop.f32.mrf.mxu1 }
 0x15c   :  { %v3080_v18 = vadd.f32 %v4100_v15, %v3032_v41 }
 0x15d   :  { %v3071_v4 = vpop.f32.mrf.mxu1 }
 0x15e   :  { %v3072_v48 = vadd.f32 %v3071_v4, %v3024_v47  ;;  %v3192_v10 = vrot.slane %v3080_v18, %v4477_v43 }
 0x15f   :  { %v4101_v54 = vpop.f32.mrf.mxu1 }
 0x160   :  { %v3088_v52 = vcombine.high %v3072_v48, %v3072_v48  ;;  %v3095_v46 = vrot.slane %v3072_v48, %v4477_v43  ;;  %v3193_v11 = vcombine.high %v3192_v10, %v3192_v10  ;;  %v3200_v49 = vrot.slane %v3192_v10, %v4477_v43 }
 0x161   :  { %v3074_v17 = vpop.f32.mrf.mxu1 }
 0x162   :  { %v3102_v13 = vrot.slane %v3088_v52, %v4477_v43  ;;  %v3103_v50 = vcombine.high %v3095_v46, %v3095_v46  ;;  %v3075_v1 = vadd.f32 %v3074_v17, %v3027_v30  ;;  %v3111_v42 = vrot.slane %v3095_v46, %v4477_v43 }
 0x163   :  { %v3207_v31 = vrot.slane %v3193_v11, %v4477_v43 }
 0x164   :  { %v3104_v26 = vcombine.high %v3102_v13, %v3102_v13  ;;  %v3125_v59 = vrot.slane %v3103_v50, %v4477_v43  ;;  %v3137_v23 = vcombine.high %v3075_v1, %v3075_v1  ;;  %v3118_v61 = vrot.slane %v3102_v13, %v4477_v43 }
 0x165   :  { %v3144_v56 = vrot.slane %v3075_v1, %v4477_v43  ;;  %v3326_v45 = vrot.slane %v3207_v31, %v4477_v43 }
 0x166   :  { %v3132_v57 = vrot.slane %v3104_v26, %v4477_v43  ;;  %v3208_v2 = vcombine.low %v3111_v42, %v3125_v59  ;;  %v3871_v55 = vcombine.high %v3111_v42, %v3125_v59  ;;  %v3151_v24 = vrot.slane %v3137_v23, %v4477_v43 }
 0x167   :  { %v3152_v40 = vcombine.high %v3144_v56, %v3144_v56  ;;  %v3160_v51 = vrot.slane %v3144_v56, %v4477_v43  ;;  %v3333_v4 = vrot.slane %v3326_v45, %v4477_v43  ;;  %v3514_v45 = vsub.s32 4, %v4408_v21 }
 0x168   :  { %v3210_v7 = vcombine.low %v3118_v61, %v3132_v57  ;;  %v3872_v63 = vcombine.high %v3118_v61, %v3132_v57  ;;  %v3218_v9 = vrot.slane %v3208_v2, %v4477_v43  ;;  %v3225_v0 = vrot.slane %v3871_v55, %v4477_v43  ;;  %v5311_v55 = vld [vmem:[%s5374_s6] sm:$0xff] }
 0x169   :  { %v3153_v12 = vcombine.high %v3151_v24, %v3151_v24  ;;  %v3167_v14 = vrot.slane %v3151_v24, %v4477_v43  ;;  %v3174_v62 = vrot.slane %v3152_v40, %v4477_v43  ;;  %v3182_v3 = vcombine.high %v3160_v51, %v3160_v51 }
 0x16a   :  { %v3232_v5 = vrot.slane %v3210_v7, %v4477_v43  ;;  %v3239_v19 = vrot.slane %v3872_v63, %v4477_v43  ;;  %v3240_v28 = vcombine.low %v3218_v9, %v3225_v0  ;;  %v3263_v58 = vrot.slane %v3160_v51, %v4477_v43 }
 0x16b   :  { %v3181_v34 = vrot.slane %v3153_v12, %v4477_v43  ;;  %v3183_v39 = vcombine.high %v3167_v14, %v3167_v14  ;;  %v3184_v22 = vcombine.high %v3174_v62, %v3174_v62  ;;  %v3271_v6 = vcombine.low %v3174_v62, %v3182_v3  ;;  %v4271_v3 = vld [vmem:[%s5372_s4 + $0x8] sm:$0xff]  }
 0x16c   :  { %v3241_v29 = vcombine.low %v3232_v5, %v3239_v19  ;;  %v3248_v20 = vrot.slane %v3240_v28, %v4477_v43  ;;  %v3270_v16 = vrot.slane %v3263_v58, %v4477_v43  ;;  %v3348_v17 = vsel %vm1304_vm0, %v3333_v4, -inf  ;;  %4135 = vmatpush3.bf16.msra.mxu1 %v4271_v3  ;;  %v4272_v5 = vld [vmem:[%s5372_s4] sm:$0xff]   ;;  %v4273_v19 = vld [vmem:[%s5373_s5 + $0x38] sm:$0xff]   ;;  %v4274_v28 = vld [vmem:[%s5373_s5 + $0x30] sm:$0xff]  }
 0x16d   :  { %v3185_v60 = vcombine.high %v3181_v34, %v3181_v34  ;;  %v3272_v32 = vcombine.low %v3184_v22, %v3167_v14  ;;  %v3273_v47 = vcombine.low %v3181_v34, %v3183_v39  ;;  %v3281_v33 = vrot.slane %v3271_v6, %v4477_v43  ;;  %4136 = vmatprep.subr.bf16.mxu1 %v4304_v37  ;;  %v4275_v58 = vld [vmem:[%s5373_s5 + $0x28] sm:$0xff]   ;;  %v4276_v34 = vld [vmem:[%s5373_s5 + $0x20] sm:$0xff]   ;;  %v4277_v39 = vld [vmem:[%s5373_s5 + $0x18] sm:$0xff]  }
 0x16e   :  { %v3255_v27 = vrot.slane %v3241_v29, %v4477_v43  ;;  %v3339_v15 = vsel %vm1304_vm0, %v3270_v16, -inf  ;;  %v3376_v24 = vsub.s32 1, %v4408_v21  ;;  %v3381_v51 = vsub.s32 2, %v4408_v21  ;;  %v4278_v22 = vld [vmem:[%s5373_s5 + $0x10] sm:$0xff]  }
 0x16f   :  { %v3288_v30 = vrot.slane %v3272_v32, %v4477_v43  ;;  %v3274_v36 = vcombine.low %v3185_v60, %v3200_v49  ;;  %v3295_v53 = vrot.slane %v3273_v47, %v4477_v43  ;;  %v3404_v6 = vsub.s32 3, %v4408_v21 }
 0x170   :  { %v3256_v38 = vcombine.low %v3248_v20, %v3255_v27  ;;  %v3377_v31 = vrot.slane %v5311_v55, %v3376_v24  ;;  %v3382_v9 = vrot.slane %v5311_v55, %v3381_v51  ;;  %4137 = vmatpush3.bf16.msra.mxu1 %v4272_v5  ;;  %v3624_v4 = vsub.s32 5, %v4408_v21 }
 0x171   :  { %v3303_v41 = vcombine.low %v3281_v33, %v3288_v30  ;;  %v3302_v35 = vrot.slane %v3274_v36, %v4477_v43  ;;  %v3405_v29 = vrot.slane %v5311_v55, %v3404_v6  ;;  %v4279_v30 = vld [vmem:[%s5373_s5 + $0x8] sm:$0xff]   ;;  %v4280_v36 = vld [vmem:[%s5373_s5] sm:$0xff]   ;;  %s4281_s5 = scalar_lea.vmem %s3722_s28, 32 }
 0x172   :  { %v3338_v44 = vsel %vm1299_vm1, %v3256_v38, -inf  ;;  %v3515_v38 = vrot.slane %v5311_v55, %v3514_v45  ;;  %p4282_p0 = scmp.ne.s32.totalorder %s3722_s28, %s4281_s5  ;;  %p4287_p2 = scmp.lt.s32.totalorder %s4281_s5, %s4281_s5 }
 0x173   :  { %v3340_v8 = vmax.f32 %v3338_v44, %v3339_v15  ;;  %v3304_v18 = vcombine.low %v3295_v53, %v3302_v35  ;;  %v3311_v48 = vrot.slane %v3303_v41, %v4477_v43 }
 0x174   :  { %p4288_p3 = por %p4287_p2, %p4286_p1 }
 0x175   :  { %v3341_v54 = vrot.slane %v3340_v8, 4  ;;  %v3318_v25 = vrot.slane %v3304_v18, %v4477_v43  ;;  %v3371_v43 = vsub.s32 0, %v4408_v21 }
 0x176   :  { %p4289_p4 = pnand %p4288_p3, %p4282_p0 }
 0x177   :  { %v3319_v52 = vcombine.low %v3311_v48, %v3318_v25  ;;  %v3342_v46 = vmax.f32 %v3340_v8, %v3341_v54  ;;  %v3372_v40 = vrot.slane %v5311_v55, %v3371_v43 }
 0x179   :  { %v3347_v10 = vsel %vm1299_vm1, %v3319_v52, -inf  ;;  %v3343_v13 = vrot.slane %v3342_v46, 2 }
 0x17a   :  { %v3349_v50 = vmax.f32 %v3347_v10, %v3348_v17 }
 0x17b   :  { %v3344_v11 = vmax.f32 %v3342_v46, %v3343_v13 }
 0x17c   :  { %v3350_v1 = vrot.slane %v3349_v50, 4 }
 0x17d   :  { %v3345_v59 = vrot.slane %v3344_v11, 1 }
 0x17e   :  { %v3351_v26 = vmax.f32 %v3349_v50, %v3350_v1 }
 0x17f   :  { %v3346_v56 = vmax.f32 %v3344_v11, %v3345_v59 }
 0x180   :  { %v3352_v42 = vrot.slane %v3351_v26, 2 }
 0x182   :  { %v3353_v23 = vmax.f32 %v3351_v26, %v3352_v42 }
 0x184   :  { %v3354_v61 = vrot.slane %v3353_v23, 1 }
 0x186   :  { %v3355_v57 = vmax.f32 %v3353_v23, %v3354_v61 }
 0x188   :  { %v3360_v2 = vsel %vm3359_vm2, %v3355_v57, %v3346_v56 }
 0x1c1   :  { %v3366_v49 = vpop.permute.xlu0 %3365 }
 0x1c2   :  { %v3368_v7 = vsel %vm1299_vm1, %v3360_v2, %v3366_v49 }
 0x1c3   :  { %v3373_v63 = vadd.f32 %v3372_v40, %v3368_v7 }
 0x1c5   :  { %v3378_v0 = vmul.f32 %v3377_v31, %v3373_v63 }
 0x1c7   :  { %v3383_v12 = vadd.f32 %v3382_v9, %v3378_v0 }
 0x1c9   :  { %v3384_v14 = vmax.f32 %v3383_v12, 0.0 }
 0x1cb   :  { %v3385_v62 = vpack.c.bf16 %v3384_v14, %v3384_v14 }
 0x1cd   :  { %4119 = vmatmul.mubr.bf16.vlgmr.msra.gmra.mxu0 %v3385_v62 }
 0x1ce   :  { %4158 = vmatprep.mubr.msk.bf16.mxu0 %vm4305_vm3, %v4304_v37  ;;  %4143 = vmatpush3.bf16.msra.mxu0 %v4273_v19 }
 0x1cf   :  { %4144 = vmatprep.subr.bf16.mxu0 %v4304_v37 }
 0x1d2   :  { %4145 = vmatpush3.bf16.msra.mxu0 %v4274_v28 }
 0x1d3   :  { %4146 = vmatprep.subr.bf16.mxu0 %v4304_v37 }
 0x1d6   :  { %4147 = vmatpush3.bf16.msra.mxu0 %v4275_v58 }
 0x1d7   :  { %4148 = vmatprep.subr.bf16.mxu0 %v4304_v37 }
 0x1da   :  { %4149 = vmatpush3.bf16.msra.mxu0 %v4276_v34 }
 0x1db   :  { %4150 = vmatprep.subr.bf16.mxu0 %v4304_v37 }
 0x1de   :  { %4151 = vmatpush3.bf16.msra.mxu0 %v4277_v39 }
 0x1df   :  { %4152 = vmatprep.subr.bf16.mxu0 %v4304_v37 }
 0x1e2   :  { %4153 = vmatpush3.bf16.msra.mxu0 %v4278_v22 }
 0x1e3   :  { %4154 = vmatprep.subr.bf16.mxu0 %v4304_v37 }
 0x1e6   :  { %4155 = vmatpush3.bf16.msra.mxu0 %v4279_v30 }
 0x1e7   :  { %4156 = vmatprep.subr.bf16.mxu0 %v4304_v37  ;;  %v3625_v37 = vrot.slane %v5311_v55, %v3624_v4 }
 0x1ea   :  { %4157 = vmatpush3.bf16.msra.mxu0 %v4280_v36 }
 0x28d   :  { %v3488_v60 = vpop.f32.mrf.mxu0 }
 0x28e   :  { %v3489_v32 = vadd.f32 %v3488_v60, %v3405_v29 }
 0x28f   :  { %v4120_v47 = vpop.f32.mrf.mxu0 }
 0x290   :  { %v3494_v20 = vmax.f32 %v3489_v32, 0.0 }
 0x291   :  { %v3491_v27 = vpop.f32.mrf.mxu0 }
 0x292   :  { %v3495_v16 = vpack.c.bf16 %v3494_v20, %v3494_v20 }
 0x293   :  { %v4121_v33 = vpop.f32.mrf.mxu0 }
 0x294   :  { %4139 = vmatmul.mubr.bf16.vlgmr.msra.gmra.mxu1 %v3495_v16 }
 0x354   :  { %v3598_v53 = vpop.f32.mrf.mxu1 }
 0x355   :  { %v3599_v41 = vadd.f32 %v3598_v53, %v3515_v38 }
 0x356   :  { %v4140_v35 = vpop.f32.mrf.mxu1 }
 0x357   :  { %v3604_v44 = vadd.f32 %v3599_v41, %v3373_v63 }
 0x358   :  { %v3601_v15 = vpop.f32.mrf.mxu1 }
 0x359   :  { %v3605_v8 = vpack.c.bf16 %v3604_v44, %v3604_v44 }
 0x35a   :  { %v4141_v18 = vpop.f32.mrf.mxu1 }
 0x35b   :  { %4159 = vmatmul.mubr.bf16.vlgmr.msra.gmra.mxu0 %v3605_v8 }
 0x41b   :  { %v3708_v48 = vpop.f32.mrf.mxu0 }
 0x41c   :  { %v3709_v54 = vadd.f32 %v3708_v48, %v3625_v37 }
 0x41d   :  { %v4160_v25 = vpop.f32.mrf.mxu0 }
 0x41e   :  { %3714 = vst [vmem:[#allocation2] sm:$0x3] %v3709_v54 }
 0x41f   :  { %v3711_v52 = vpop.f32.mrf.mxu0 }
 0x420   :  { %4292 = shalt.err (!%p4289_p4)
}
 0x421   :  { %3724 = dma.vmem_to_hbm [thread:$0]  %s3722_s28, 32, %s5375_s7, [#allocation3]   ;;  %v4161_v21 = vpop.f32.mrf.mxu0 }
 0x422   :  { %4301 = dma.done.wait [#allocation3], 32  }
 0x423   :  { %4302 = vsyncadd [#allocation3], 4294967264 }
 0x424   :  { %3728 = vsyncpa [#allocation3], 1 }

</bundles_post_ra>
